<compile_context>
chip_gen: v6e
topology: v6e:2x2x1
jax: 0.10.0
libtpu: 0.0.40
codegen_flags: <defaults>
</compile_context>

<pallas_src>
import jax
import jax.numpy as jnp
from jax.experimental import pallas as pl
from jax.experimental.pallas import tpu as pltpu


# ---------------------------------------------------------------------------
# Pallas kernels
# ---------------------------------------------------------------------------
def _make_causal_conv_kernel(dilation: int, apply_relu: bool, has_residual: bool):
    """Fused causal dilated conv1d (+ bias [+ ReLU] [+ residual-add + ReLU])."""

    def kernel(x_ref, w_ref, b_ref, *rest):
        if has_residual:
            r_ref, o_ref = rest
        else:
            (o_ref,) = rest

        k = w_ref.shape[0]
        c_out = w_ref.shape[2]
        l_out = o_ref.shape[1]

        x = x_ref[...]            # (1, L_pad, C_in)  — causally left-padded window
        w = w_ref[...]            # (k, C_in, C_out)

        acc = jnp.zeros((l_out, c_out), jnp.float32)
        for j in range(k):        # static unroll: k MXU matmuls, f32 accumulate
            xj = x[0, j * dilation : j * dilation + l_out, :]          # (L_out, C_in)
            acc = acc + jnp.dot(xj, w[j], preferred_element_type=jnp.float32)

        acc = acc + b_ref[...]    # (1, C_out) broadcast over rows
        if apply_relu:            # fused ReLU (Chomp already folded away)
            acc = jnp.maximum(acc, 0.0)
        if has_residual:          # TemporalBlock: relu(residual + branch)
            acc = jnp.maximum(acc + r_ref[...][0], 0.0)

        o_ref[...] = acc[None].astype(o_ref.dtype)

    return kernel


def _pool_fc_kernel(x_ref, w_ref, b_ref, o_ref):
    """AdaptiveAvgPool1d(1) + squeeze + Linear, fused."""
    x = x_ref[...].astype(jnp.float32)        # (N, L, C)
    pooled = jnp.mean(x, axis=1)              # (N, C)
    logits = jnp.dot(pooled, w_ref[...], preferred_element_type=jnp.float32)
    o_ref[...] = (logits + b_ref[...]).astype(o_ref.dtype)


# ---------------------------------------------------------------------------
# pallas_call wrappers
# ---------------------------------------------------------------------------
_VMEM_LIMIT = 32 * 1024 * 1024   # explicit scoped-VMEM budget (safe on v5e/v6e/v7x)


def causal_conv1d(x_pad, w_kio, bias, *, dilation, l_out, apply_relu, residual=None):
    """x_pad: (N, L_pad, C_in) already causally left-padded; w_kio: (k, C_in, C_out)."""
    n, l_pad, c_in = x_pad.shape
    k, c_in_w, c_out = w_kio.shape
    assert c_in_w == c_in
    assert l_pad >= l_out + dilation * (k - 1)
    bias2 = bias.reshape(1, c_out)

    kernel = _make_causal_conv_kernel(dilation, apply_relu, residual is not None)

    in_specs = [
        pl.BlockSpec((1, l_pad, c_in), lambda i: (i, 0, 0)),
        pl.BlockSpec((k, c_in, c_out), lambda i: (0, 0, 0)),   # weights stay resident
        pl.BlockSpec((1, c_out), lambda i: (0, 0)),
    ]
    args = [x_pad, w_kio, bias2]
    if residual is not None:
        in_specs.append(pl.BlockSpec((1, l_out, c_out), lambda i: (i, 0, 0)))
        args.append(residual)

    # NOTE: at real TCN sizes (long L), add an L-tile grid axis (128-multiple lane
    # tiles with a dilation*(k-1) halo).  At these demo shapes one block per batch
    # element already fits comfortably in VMEM.
    return pl.pallas_call(
        kernel,
        out_shape=jax.ShapeDtypeStruct((n, l_out, c_out), x_pad.dtype),
        grid_spec=pltpu.PrefetchScalarGridSpec(
            num_scalar_prefetch=0,
            grid=(n,),
            in_specs=in_specs,
            out_specs=pl.BlockSpec((1, l_out, c_out), lambda i: (i, 0, 0)),
        ),
        compiler_params=pltpu.CompilerParams(
            dimension_semantics=("parallel",),
            vmem_limit_bytes=_VMEM_LIMIT,
        ),
    )(*args)


def pool_fc(x_nlc, w_cn, bias):
    """x_nlc: (N, L, C); w_cn: (C, num_classes)."""
    n, l, c = x_nlc.shape
    nc = w_cn.shape[1]
    return pl.pallas_call(
        _pool_fc_kernel,
        out_shape=jax.ShapeDtypeStruct((n, nc), x_nlc.dtype),
        grid_spec=pltpu.PrefetchScalarGridSpec(
            num_scalar_prefetch=0,
            grid=(1,),
            in_specs=[
                pl.BlockSpec((n, l, c), lambda i: (0, 0, 0)),
                pl.BlockSpec((c, nc), lambda i: (0, 0)),
                pl.BlockSpec((1, nc), lambda i: (0, 0)),
            ],
            out_specs=pl.BlockSpec((n, nc), lambda i: (0, 0)),
        ),
        compiler_params=pltpu.CompilerParams(
            dimension_semantics=("arbitrary",),
            vmem_limit_bytes=_VMEM_LIMIT,
        ),
    )(x_nlc, w_cn, bias.reshape(1, nc))


# ---------------------------------------------------------------------------
# Model wrapper (parameter plumbing + layout, all heavy compute in Pallas)
# ---------------------------------------------------------------------------
def weight_norm_weight(v, g):
    """PyTorch weight_norm (dim=0) for Conv1d weights: w = g * v / ||v||."""
    norm = jnp.sqrt(jnp.sum(v * v, axis=(1, 2), keepdims=True))
    return v * (g[:, None, None] / norm)


def _to_kio(w_oik):
    return jnp.transpose(w_oik, (2, 1, 0))   # (C_out, C_in, k) -> (k, C_in, C_out)


def _pad_left(x_nlc, p):
    return jnp.pad(x_nlc, ((0, 0), (p, 0), (0, 0)))


def temporal_conv_net_forward(x_ncl, p):
    """TemporalConvNet(in_channels, [64,64,128], kernel_size=3).forward, eval mode."""
    n, c_in, l = x_ncl.shape
    x = jnp.transpose(x_ncl, (0, 2, 1))       # channel-last: channels on TPU lanes

    # ---- Stem: weight_norm Conv1d(k=14, stride=7, pad=7) + Chomp1d(2) + ReLU.
    # Chomp is folded away: only the L1 causal outputs are computed, using
    # left-padding only.  Re-block 7 time-steps into channels so the strided
    # conv becomes a 2-tap stride-1 causal conv.
    w0 = weight_norm_weight(p["conv0_v"], p["conv0_g"])     # (64, C_in, 14)
    c0 = w0.shape[0]
    l1 = l // 7 - 1
    assert l1 >= 1
    x_lp = jnp.pad(x, ((0, 0), (7, 0), (0, 0)))[:, : 7 * (l1 + 1), :]
    xb = x_lp.reshape(n, l1 + 1, 7 * c_in)                    # (N, L1+1, 7*C_in)
    w0_blk = jnp.transpose(w0, (2, 1, 0)).reshape(2, 7 * c_in, c0)
    h = causal_conv1d(xb, w0_blk, p["conv0_b"], dilation=1, l_out=l1, apply_relu=True)

    # ---- TemporalBlock 1: 64 -> 64, kernel 3, dilation 2 (causal pad 4).
    w11 = _to_kio(weight_norm_weight(p["b1c1_v"], p["b1c1_g"]))
    w12 = _to_kio(weight_norm_weight(p["b1c2_v"], p["b1c2_g"]))
    a = causal_conv1d(_pad_left(h, 4), w11, p["b1c1_b"], dilation=2, l_out=l1,
                      apply_relu=True)
    h = causal_conv1d(_pad_left(a, 4), w12, p["b1c2_b"], dilation=2, l_out=l1,
                      apply_relu=True, residual=h)            # + residual + final ReLU

    # ---- TemporalBlock 2: 64 -> 128, kernel 3, dilation 4 (causal pad 8), 1x1 downsample.
    w21 = _to_kio(weight_norm_weight(p["b2c1_v"], p["b2c1_g"]))
    w22 = _to_kio(weight_norm_weight(p["b2c2_v"], p["b2c2_g"]))
    wds = _to_kio(p["b2ds_w"])
    res = causal_conv1d(h, wds, p["b2ds_b"], dilation=1, l_out=l1, apply_relu=False)
    a = causal_conv1d(_pad_left(h, 8), w21, p["b2c1_b"], dilation=4, l_out=l1,
                      apply_relu=True)
    h = causal_conv1d(_pad_left(a, 8), w22, p["b2c2_b"], dilation=4, l_out=l1,
                      apply_relu=True, residual=res)

    # ---- AdaptiveAvgPool1d(1) + squeeze + Linear (fused).
    return pool_fc(h, jnp.transpose(p["fc_w"]), p["fc_b"])


# ---------------------------------------------------------------------------
# Parameters (PyTorch layout, deterministic) and a pure-XLA reference
# ---------------------------------------------------------------------------
def init_params(key, in_channels=4, num_channels=(64, 64, 128), kernel_size=3,
                num_classes=2):
    ks = jax.random.split(key, 24)

    def nrm(k, shape, scale=0.01):
        return (scale * jax.random.normal(k, shape)).astype(jnp.float32)

    def gain(k, c):
        return jax.random.uniform(k, (c,), minval=0.5, maxval=1.5, dtype=jnp.float32)

    c0, c1, c2 = num_channels
    p = {
        "conv0_v": nrm(ks[0], (c0, in_channels, 14)), "conv0_g": gain(ks[1], c0),
        "conv0_b": nrm(ks[2], (c0,), 0.1),
        "b1c1_v": nrm(ks[3], (c1, c0, kernel_size)), "b1c1_g": gain(ks[4], c1),
        "b1c1_b": nrm(ks[5], (c1,), 0.1),
        "b1c2_v": nrm(ks[6], (c1, c1, kernel_size)), "b1c2_g": gain(ks[7], c1),
        "b1c2_b": nrm(ks[8], (c1,), 0.1),
        "b2c1_v": nrm(ks[9], (c2, c1, kernel_size)), "b2c1_g": gain(ks[10], c2),
        "b2c1_b": nrm(ks[11], (c2,), 0.1),
        "b2c2_v": nrm(ks[12], (c2, c2, kernel_size)), "b2c2_g": gain(ks[13], c2),
        "b2c2_b": nrm(ks[14], (c2,), 0.1),
        "b2ds_w": nrm(ks[15], (c2, c1, 1)), "b2ds_b": nrm(ks[16], (c2,), 0.1),
        "fc_w": nrm(ks[17], (num_classes, c2), 0.1), "fc_b": nrm(ks[18], (num_classes,), 0.1),
    }
    return p


def reference_forward(x_ncl, p):
    """Pure-JAX (XLA conv) reference with PyTorch semantics: conv -> chomp -> relu."""

    def conv1d(x, w, b, stride, padding, dilation):
        y = jax.lax.conv_general_dilated(
            x, w, window_strides=(stride,), padding=[(padding, padding)],
            rhs_dilation=(dilation,), dimension_numbers=("NCH", "OIH", "NCH"),
            precision=jax.lax.Precision.HIGHEST)
        return y + b[None, :, None]

    relu = lambda t: jnp.maximum(t, 0.0)
    wn = weight_norm_weight

    h = relu(conv1d(x_ncl, wn(p["conv0_v"], p["conv0_g"]), p["conv0_b"], 7, 7, 1)[:, :, :-2])

    res = h
    a = relu(conv1d(h, wn(p["b1c1_v"], p["b1c1_g"]), p["b1c1_b"], 1, 4, 2)[:, :, :-4])
    bb = relu(conv1d(a, wn(p["b1c2_v"], p["b1c2_g"]), p["b1c2_b"], 1, 4, 2)[:, :, :-4])
    h = relu(res + bb)

    res = conv1d(h, p["b2ds_w"], p["b2ds_b"], 1, 0, 1)
    a = relu(conv1d(h, wn(p["b2c1_v"], p["b2c1_g"]), p["b2c1_b"], 1, 8, 4)[:, :, :-8])
    bb = relu(conv1d(a, wn(p["b2c2_v"], p["b2c2_g"]), p["b2c2_b"], 1, 8, 4)[:, :, :-8])
    h = relu(res + bb)

    pooled = jnp.mean(h, axis=2)              # AdaptiveAvgPool1d(1) + squeeze
    return pooled @ p["fc_w"].T + p["fc_b"][None, :]


if __name__ == "__main__":
    key = jax.random.PRNGKey(0)
    k_x, k_p = jax.random.split(key)

    # Small shapes consistent with the module: (batch=2, in_channels=4, seq=119).
    # The stride-7 stem + Chomp1d(2) maps L=119 -> L1=16 internal time-steps.
    N, C_IN, L = 2, 4, 119
    x = jax.random.normal(k_x, (N, C_IN, L), dtype=jnp.float32)
    params = init_params(k_p, in_channels=C_IN)

    out = jax.jit(temporal_conv_net_forward)(x, params)
    out = jax.block_until_ready(out)

    ref = reference_forward(x, params)
    assert out.shape == ref.shape == (N, 2), (out.shape, ref.shape)
    assert bool(jnp.allclose(out, ref, atol=1e-3, rtol=1e-3)), (out, ref)

    print("KERNEL_OK")
</pallas_src>

<mosaic_0001>
module attributes {stable_mosaic.version = 11 : i64} {
  func.func @kernel(%arg0: i32, %arg1: memref<1x20x64xf32, #tpu.memory_space<vmem>>, %arg2: memref<3x64x64xf32, #tpu.memory_space<vmem>>, %arg3: memref<1x64xf32, #tpu.memory_space<vmem>>, %arg4: memref<1x16x64xf32, #tpu.memory_space<vmem>>) attributes {dimension_semantics = [#tpu.dimension_semantics<parallel>], iteration_bounds = array<i64: 2>, scalar_prefetch = 0 : i64, scratch_operands = 0 : i64, tpu.core_type = #tpu.core_type<tc>, window_params = [{transform_indices = @transform_0, window_bounds = array<i64: 1, 20, 64>}, {pipeline_mode = #tpu.pipeline_mode<synchronous>, transform_indices = @transform_1, window_bounds = array<i64: 3, 64, 64>}, {pipeline_mode = #tpu.pipeline_mode<synchronous>, transform_indices = @transform_2, window_bounds = array<i64: 1, 64>}, {transform_indices = @transform_3, window_bounds = array<i64: 1, 16, 64>}]} {
    %c0 = arith.constant 0 : index
    %c0_0 = arith.constant 0 : index
    %c0_1 = arith.constant 0 : index
    %0 = vector.load %arg1[%c0, %c0_0, %c0_1] : memref<1x20x64xf32, #tpu.memory_space<vmem>>, vector<1x20x64xf32>
    %c0_2 = arith.constant 0 : index
    %c0_3 = arith.constant 0 : index
    %c0_4 = arith.constant 0 : index
    %1 = vector.load %arg2[%c0_2, %c0_3, %c0_4] : memref<3x64x64xf32, #tpu.memory_space<vmem>>, vector<3x64x64xf32>
    %cst = arith.constant 0.000000e+00 : f32
    %2 = vector.broadcast %cst : f32 to vector<16x64xf32>
    %3 = vector.extract_strided_slice %0 {offsets = [0, 0, 0], sizes = [1, 16, 64], strides = [1, 1, 1]} : vector<1x20x64xf32> to vector<1x16x64xf32>
    %4 = vector.shape_cast %3 : vector<1x16x64xf32> to vector<16x64xf32>
    %5 = vector.extract_strided_slice %1 {offsets = [0, 0, 0], sizes = [1, 64, 64], strides = [1, 1, 1]} : vector<3x64x64xf32> to vector<1x64x64xf32>
    %6 = vector.shape_cast %5 : vector<1x64x64xf32> to vector<64x64xf32>
    %cst_5 = arith.constant dense<0.000000e+00> : vector<16x64xf32>
    %7 = tpu.matmul %4, %6, %cst_5 {dimension_numbers = #tpu.dot_dimension_numbers<[1], [0], [0], [1], [0, 0, 1, 1], [], []>} : vector<16x64xf32>, vector<64x64xf32>, vector<16x64xf32> -> vector<16x64xf32>
    %8 = arith.addf %2, %7 : vector<16x64xf32>
    %9 = vector.extract_strided_slice %0 {offsets = [0, 2, 0], sizes = [1, 16, 64], strides = [1, 1, 1]} : vector<1x20x64xf32> to vector<1x16x64xf32>
    %10 = vector.shape_cast %9 : vector<1x16x64xf32> to vector<16x64xf32>
    %11 = vector.extract_strided_slice %1 {offsets = [1, 0, 0], sizes = [1, 64, 64], strides = [1, 1, 1]} : vector<3x64x64xf32> to vector<1x64x64xf32>
    %12 = vector.shape_cast %11 : vector<1x64x64xf32> to vector<64x64xf32>
    %cst_6 = arith.constant dense<0.000000e+00> : vector<16x64xf32>
    %13 = tpu.matmul %10, %12, %cst_6 {dimension_numbers = #tpu.dot_dimension_numbers<[1], [0], [0], [1], [0, 0, 1, 1], [], []>} : vector<16x64xf32>, vector<64x64xf32>, vector<16x64xf32> -> vector<16x64xf32>
    %14 = arith.addf %8, %13 : vector<16x64xf32>
    %15 = vector.extract_strided_slice %0 {offsets = [0, 4, 0], sizes = [1, 16, 64], strides = [1, 1, 1]} : vector<1x20x64xf32> to vector<1x16x64xf32>
    %16 = vector.shape_cast %15 : vector<1x16x64xf32> to vector<16x64xf32>
    %17 = vector.extract_strided_slice %1 {offsets = [2, 0, 0], sizes = [1, 64, 64], strides = [1, 1, 1]} : vector<3x64x64xf32> to vector<1x64x64xf32>
    %18 = vector.shape_cast %17 : vector<1x64x64xf32> to vector<64x64xf32>
    %cst_7 = arith.constant dense<0.000000e+00> : vector<16x64xf32>
    %19 = tpu.matmul %16, %18, %cst_7 {dimension_numbers = #tpu.dot_dimension_numbers<[1], [0], [0], [1], [0, 0, 1, 1], [], []>} : vector<16x64xf32>, vector<64x64xf32>, vector<16x64xf32> -> vector<16x64xf32>
    %20 = arith.addf %14, %19 : vector<16x64xf32>
    %c0_8 = arith.constant 0 : index
    %c0_9 = arith.constant 0 : index
    %21 = vector.load %arg3[%c0_8, %c0_9] : memref<1x64xf32, #tpu.memory_space<vmem>>, vector<1x64xf32>
    %22 = vector.broadcast %21 : vector<1x64xf32> to vector<16x64xf32>
    %23 = arith.addf %20, %22 : vector<16x64xf32>
    %cst_10 = arith.constant 0.000000e+00 : f32
    %24 = vector.broadcast %cst_10 : f32 to vector<16x64xf32>
    %25 = arith.maximumf %23, %24 : vector<16x64xf32>
    %26 = vector.shape_cast %25 : vector<16x64xf32> to vector<1x16x64xf32>
    %c0_11 = arith.constant 0 : index
    %c0_12 = arith.constant 0 : index
    %c0_13 = arith.constant 0 : index
    %27 = vector.load %arg4[%c0_11, %c0_12, %c0_13] : memref<1x16x64xf32, #tpu.memory_space<vmem>>, vector<1x16x64xf32>
    tpu.vector_store %arg4[%c0_11, %c0_12, %c0_13], %26 {strides = array<i32>} : memref<1x16x64xf32, #tpu.memory_space<vmem>>, vector<1x16x64xf32>,
    return
  }
  func.func @transform_0(%arg0: i32) -> (i32, i32, i32) {
    %c0_i32 = arith.constant 0 : i32
    %c0_i32_0 = arith.constant 0 : i32
    %c0_i32_1 = arith.constant 0 : i32
    return %arg0, %c0_i32, %c0_i32_0 : i32, i32, i32
  }
  func.func @transform_1(%arg0: i32) -> (i32, i32, i32) {
    %c0_i32 = arith.constant 0 : i32
    %c0_i32_0 = arith.constant 0 : i32
    %c0_i32_1 = arith.constant 0 : i32
    %c0_i32_2 = arith.constant 0 : i32
    return %c0_i32, %c0_i32_0, %c0_i32_1 : i32, i32, i32
  }
  func.func @transform_2(%arg0: i32) -> (i32, i32) {
    %c0_i32 = arith.constant 0 : i32
    %c0_i32_0 = arith.constant 0 : i32
    %c0_i32_1 = arith.constant 0 : i32
    return %c0_i32, %c0_i32_0 : i32, i32
  }
  func.func @transform_3(%arg0: i32) -> (i32, i32, i32) {
    %c0_i32 = arith.constant 0 : i32
    %c0_i32_0 = arith.constant 0 : i32
    %c0_i32_1 = arith.constant 0 : i32
    return %arg0, %c0_i32, %c0_i32_0 : i32, i32, i32
  }
}

module attributes {stable_mosaic.version = 11 : i64} {
  func.func @kernel(%arg0: i32, %arg1: memref<1x17x28xf32, #tpu.memory_space<vmem>>, %arg2: memref<2x28x64xf32, #tpu.memory_space<vmem>>, %arg3: memref<1x64xf32, #tpu.memory_space<vmem>>, %arg4: memref<1x16x64xf32, #tpu.memory_space<vmem>>) attributes {dimension_semantics = [#tpu.dimension_semantics<parallel>], iteration_bounds = array<i64: 2>, scalar_prefetch = 0 : i64, scratch_operands = 0 : i64, tpu.core_type = #tpu.core_type<tc>, window_params = [{transform_indices = @transform_0, window_bounds = array<i64: 1, 17, 28>}, {pipeline_mode = #tpu.pipeline_mode<synchronous>, transform_indices = @transform_1, window_bounds = array<i64: 2, 28, 64>}, {pipeline_mode = #tpu.pipeline_mode<synchronous>, transform_indices = @transform_2, window_bounds = array<i64: 1, 64>}, {transform_indices = @transform_3, window_bounds = array<i64: 1, 16, 64>}]} {
    %c0 = arith.constant 0 : index
    %c0_0 = arith.constant 0 : index
    %c0_1 = arith.constant 0 : index
    %0 = vector.load %arg1[%c0, %c0_0, %c0_1] : memref<1x17x28xf32, #tpu.memory_space<vmem>>, vector<1x17x28xf32>
    %c0_2 = arith.constant 0 : index
    %c0_3 = arith.constant 0 : index
    %c0_4 = arith.constant 0 : index
    %1 = vector.load %arg2[%c0_2, %c0_3, %c0_4] : memref<2x28x64xf32, #tpu.memory_space<vmem>>, vector<2x28x64xf32>
    %cst = arith.constant 0.000000e+00 : f32
    %2 = vector.broadcast %cst : f32 to vector<16x64xf32>
    %3 = vector.extract_strided_slice %0 {offsets = [0, 0, 0], sizes = [1, 16, 28], strides = [1, 1, 1]} : vector<1x17x28xf32> to vector<1x16x28xf32>
    %4 = vector.shape_cast %3 : vector<1x16x28xf32> to vector<16x28xf32>
    %5 = vector.extract_strided_slice %1 {offsets = [0, 0, 0], sizes = [1, 28, 64], strides = [1, 1, 1]} : vector<2x28x64xf32> to vector<1x28x64xf32>
    %6 = vector.shape_cast %5 : vector<1x28x64xf32> to vector<28x64xf32>
    %cst_5 = arith.constant dense<0.000000e+00> : vector<16x64xf32>
    %7 = tpu.matmul %4, %6, %cst_5 {dimension_numbers = #tpu.dot_dimension_numbers<[1], [0], [0], [1], [0, 0, 1, 1], [], []>} : vector<16x28xf32>, vector<28x64xf32>, vector<16x64xf32> -> vector<16x64xf32>
    %8 = arith.addf %2, %7 : vector<16x64xf32>
    %9 = vector.extract_strided_slice %0 {offsets = [0, 1, 0], sizes = [1, 16, 28], strides = [1, 1, 1]} : vector<1x17x28xf32> to vector<1x16x28xf32>
    %10 = vector.shape_cast %9 : vector<1x16x28xf32> to vector<16x28xf32>
    %11 = vector.extract_strided_slice %1 {offsets = [1, 0, 0], sizes = [1, 28, 64], strides = [1, 1, 1]} : vector<2x28x64xf32> to vector<1x28x64xf32>
    %12 = vector.shape_cast %11 : vector<1x28x64xf32> to vector<28x64xf32>
    %cst_6 = arith.constant dense<0.000000e+00> : vector<16x64xf32>
    %13 = tpu.matmul %10, %12, %cst_6 {dimension_numbers = #tpu.dot_dimension_numbers<[1], [0], [0], [1], [0, 0, 1, 1], [], []>} : vector<16x28xf32>, vector<28x64xf32>, vector<16x64xf32> -> vector<16x64xf32>
    %14 = arith.addf %8, %13 : vector<16x64xf32>
    %c0_7 = arith.constant 0 : index
    %c0_8 = arith.constant 0 : index
    %15 = vector.load %arg3[%c0_7, %c0_8] : memref<1x64xf32, #tpu.memory_space<vmem>>, vector<1x64xf32>
    %16 = vector.broadcast %15 : vector<1x64xf32> to vector<16x64xf32>
    %17 = arith.addf %14, %16 : vector<16x64xf32>
    %cst_9 = arith.constant 0.000000e+00 : f32
    %18 = vector.broadcast %cst_9 : f32 to vector<16x64xf32>
    %19 = arith.maximumf %17, %18 : vector<16x64xf32>
    %20 = vector.shape_cast %19 : vector<16x64xf32> to vector<1x16x64xf32>
    %c0_10 = arith.constant 0 : index
    %c0_11 = arith.constant 0 : index
    %c0_12 = arith.constant 0 : index
    %21 = vector.load %arg4[%c0_10, %c0_11, %c0_12] : memref<1x16x64xf32, #tpu.memory_space<vmem>>, vector<1x16x64xf32>
    tpu.vector_store %arg4[%c0_10, %c0_11, %c0_12], %20 {strides = array<i32>} : memref<1x16x64xf32, #tpu.memory_space<vmem>>, vector<1x16x64xf32>,
    return
  }
  func.func @transform_0(%arg0: i32) -> (i32, i32, i32) {
    %c0_i32 = arith.constant 0 : i32
    %c0_i32_0 = arith.constant 0 : i32
    %c0_i32_1 = arith.constant 0 : i32
    return %arg0, %c0_i32, %c0_i32_0 : i32, i32, i32
  }
  func.func @transform_1(%arg0: i32) -> (i32, i32, i32) {
    %c0_i32 = arith.constant 0 : i32
    %c0_i32_0 = arith.constant 0 : i32
    %c0_i32_1 = arith.constant 0 : i32
    %c0_i32_2 = arith.constant 0 : i32
    return %c0_i32, %c0_i32_0, %c0_i32_1 : i32, i32, i32
  }
  func.func @transform_2(%arg0: i32) -> (i32, i32) {
    %c0_i32 = arith.constant 0 : i32
    %c0_i32_0 = arith.constant 0 : i32
    %c0_i32_1 = arith.constant 0 : i32
    return %c0_i32, %c0_i32_0 : i32, i32
  }
  func.func @transform_3(%arg0: i32) -> (i32, i32, i32) {
    %c0_i32 = arith.constant 0 : i32
    %c0_i32_0 = arith.constant 0 : i32
    %c0_i32_1 = arith.constant 0 : i32
    return %arg0, %c0_i32, %c0_i32_0 : i32, i32, i32
  }
}

module attributes {stable_mosaic.version = 11 : i64} {
  func.func @kernel(%arg0: i32, %arg1: memref<1x20x64xf32, #tpu.memory_space<vmem>>, %arg2: memref<3x64x64xf32, #tpu.memory_space<vmem>>, %arg3: memref<1x64xf32, #tpu.memory_space<vmem>>, %arg4: memref<1x16x64xf32, #tpu.memory_space<vmem>>, %arg5: memref<1x16x64xf32, #tpu.memory_space<vmem>>) attributes {dimension_semantics = [#tpu.dimension_semantics<parallel>], iteration_bounds = array<i64: 2>, scalar_prefetch = 0 : i64, scratch_operands = 0 : i64, tpu.core_type = #tpu.core_type<tc>, window_params = [{transform_indices = @transform_0, window_bounds = array<i64: 1, 20, 64>}, {pipeline_mode = #tpu.pipeline_mode<synchronous>, transform_indices = @transform_1, window_bounds = array<i64: 3, 64, 64>}, {pipeline_mode = #tpu.pipeline_mode<synchronous>, transform_indices = @transform_2, window_bounds = array<i64: 1, 64>}, {transform_indices = @transform_3, window_bounds = array<i64: 1, 16, 64>}, {transform_indices = @transform_4, window_bounds = array<i64: 1, 16, 64>}]} {
    %c0 = arith.constant 0 : index
    %c0_0 = arith.constant 0 : index
    %c0_1 = arith.constant 0 : index
    %0 = vector.load %arg1[%c0, %c0_0, %c0_1] : memref<1x20x64xf32, #tpu.memory_space<vmem>>, vector<1x20x64xf32>
    %c0_2 = arith.constant 0 : index
    %c0_3 = arith.constant 0 : index
    %c0_4 = arith.constant 0 : index
    %1 = vector.load %arg2[%c0_2, %c0_3, %c0_4] : memref<3x64x64xf32, #tpu.memory_space<vmem>>, vector<3x64x64xf32>
    %cst = arith.constant 0.000000e+00 : f32
    %2 = vector.broadcast %cst : f32 to vector<16x64xf32>
    %3 = vector.extract_strided_slice %0 {offsets = [0, 0, 0], sizes = [1, 16, 64], strides = [1, 1, 1]} : vector<1x20x64xf32> to vector<1x16x64xf32>
    %4 = vector.shape_cast %3 : vector<1x16x64xf32> to vector<16x64xf32>
    %5 = vector.extract_strided_slice %1 {offsets = [0, 0, 0], sizes = [1, 64, 64], strides = [1, 1, 1]} : vector<3x64x64xf32> to vector<1x64x64xf32>
    %6 = vector.shape_cast %5 : vector<1x64x64xf32> to vector<64x64xf32>
    %cst_5 = arith.constant dense<0.000000e+00> : vector<16x64xf32>
    %7 = tpu.matmul %4, %6, %cst_5 {dimension_numbers = #tpu.dot_dimension_numbers<[1], [0], [0], [1], [0, 0, 1, 1], [], []>} : vector<16x64xf32>, vector<64x64xf32>, vector<16x64xf32> -> vector<16x64xf32>
    %8 = arith.addf %2, %7 : vector<16x64xf32>
    %9 = vector.extract_strided_slice %0 {offsets = [0, 2, 0], sizes = [1, 16, 64], strides = [1, 1, 1]} : vector<1x20x64xf32> to vector<1x16x64xf32>
    %10 = vector.shape_cast %9 : vector<1x16x64xf32> to vector<16x64xf32>
    %11 = vector.extract_strided_slice %1 {offsets = [1, 0, 0], sizes = [1, 64, 64], strides = [1, 1, 1]} : vector<3x64x64xf32> to vector<1x64x64xf32>
    %12 = vector.shape_cast %11 : vector<1x64x64xf32> to vector<64x64xf32>
    %cst_6 = arith.constant dense<0.000000e+00> : vector<16x64xf32>
    %13 = tpu.matmul %10, %12, %cst_6 {dimension_numbers = #tpu.dot_dimension_numbers<[1], [0], [0], [1], [0, 0, 1, 1], [], []>} : vector<16x64xf32>, vector<64x64xf32>, vector<16x64xf32> -> vector<16x64xf32>
    %14 = arith.addf %8, %13 : vector<16x64xf32>
    %15 = vector.extract_strided_slice %0 {offsets = [0, 4, 0], sizes = [1, 16, 64], strides = [1, 1, 1]} : vector<1x20x64xf32> to vector<1x16x64xf32>
    %16 = vector.shape_cast %15 : vector<1x16x64xf32> to vector<16x64xf32>
    %17 = vector.extract_strided_slice %1 {offsets = [2, 0, 0], sizes = [1, 64, 64], strides = [1, 1, 1]} : vector<3x64x64xf32> to vector<1x64x64xf32>
    %18 = vector.shape_cast %17 : vector<1x64x64xf32> to vector<64x64xf32>
    %cst_7 = arith.constant dense<0.000000e+00> : vector<16x64xf32>
    %19 = tpu.matmul %16, %18, %cst_7 {dimension_numbers = #tpu.dot_dimension_numbers<[1], [0], [0], [1], [0, 0, 1, 1], [], []>} : vector<16x64xf32>, vector<64x64xf32>, vector<16x64xf32> -> vector<16x64xf32>
    %20 = arith.addf %14, %19 : vector<16x64xf32>
    %c0_8 = arith.constant 0 : index
    %c0_9 = arith.constant 0 : index
    %21 = vector.load %arg3[%c0_8, %c0_9] : memref<1x64xf32, #tpu.memory_space<vmem>>, vector<1x64xf32>
    %22 = vector.broadcast %21 : vector<1x64xf32> to vector<16x64xf32>
    %23 = arith.addf %20, %22 : vector<16x64xf32>
    %cst_10 = arith.constant 0.000000e+00 : f32
    %24 = vector.broadcast %cst_10 : f32 to vector<16x64xf32>
    %25 = arith.maximumf %23, %24 : vector<16x64xf32>
    %c0_11 = arith.constant 0 : index
    %c0_12 = arith.constant 0 : index
    %c0_13 = arith.constant 0 : index
    %26 = vector.load %arg4[%c0_11, %c0_12, %c0_13] : memref<1x16x64xf32, #tpu.memory_space<vmem>>, vector<1x16x64xf32>
    %27 = vector.shape_cast %26 : vector<1x16x64xf32> to vector<16x64xf32>
    %28 = arith.addf %25, %27 : vector<16x64xf32>
    %cst_14 = arith.constant 0.000000e+00 : f32
    %29 = vector.broadcast %cst_14 : f32 to vector<16x64xf32>
    %30 = arith.maximumf %28, %29 : vector<16x64xf32>
    %31 = vector.shape_cast %30 : vector<16x64xf32> to vector<1x16x64xf32>
    %c0_15 = arith.constant 0 : index
    %c0_16 = arith.constant 0 : index
    %c0_17 = arith.constant 0 : index
    %32 = vector.load %arg5[%c0_15, %c0_16, %c0_17] : memref<1x16x64xf32, #tpu.memory_space<vmem>>, vector<1x16x64xf32>
    tpu.vector_store %arg5[%c0_15, %c0_16, %c0_17], %31 {strides = array<i32>} : memref<1x16x64xf32, #tpu.memory_space<vmem>>, vector<1x16x64xf32>,
    return
  }
  func.func @transform_0(%arg0: i32) -> (i32, i32, i32) {
    %c0_i32 = arith.constant 0 : i32
    %c0_i32_0 = arith.constant 0 : i32
    %c0_i32_1 = arith.constant 0 : i32
    return %arg0, %c0_i32, %c0_i32_0 : i32, i32, i32
  }
  func.func @transform_1(%arg0: i32) -> (i32, i32, i32) {
    %c0_i32 = arith.constant 0 : i32
    %c0_i32_0 = arith.constant 0 : i32
    %c0_i32_1 = arith.constant 0 : i32
    %c0_i32_2 = arith.constant 0 : i32
    return %c0_i32, %c0_i32_0, %c0_i32_1 : i32, i32, i32
  }
  func.func @transform_2(%arg0: i32) -> (i32, i32) {
    %c0_i32 = arith.constant 0 : i32
    %c0_i32_0 = arith.constant 0 : i32
    %c0_i32_1 = arith.constant 0 : i32
    return %c0_i32, %c0_i32_0 : i32, i32
  }
  func.func @transform_3(%arg0: i32) -> (i32, i32, i32) {
    %c0_i32 = arith.constant 0 : i32
    %c0_i32_0 = arith.constant 0 : i32
    %c0_i32_1 = arith.constant 0 : i32
    return %arg0, %c0_i32, %c0_i32_0 : i32, i32, i32
  }
  func.func @transform_4(%arg0: i32) -> (i32, i32, i32) {
    %c0_i32 = arith.constant 0 : i32
    %c0_i32_0 = arith.constant 0 : i32
    %c0_i32_1 = arith.constant 0 : i32
    return %arg0, %c0_i32, %c0_i32_0 : i32, i32, i32
  }
}

module attributes {stable_mosaic.version = 11 : i64} {
  func.func @kernel(%arg0: i32, %arg1: memref<1x24x64xf32, #tpu.memory_space<vmem>>, %arg2: memref<3x64x128xf32, #tpu.memory_space<vmem>>, %arg3: memref<1x128xf32, #tpu.memory_space<vmem>>, %arg4: memref<1x16x128xf32, #tpu.memory_space<vmem>>) attributes {dimension_semantics = [#tpu.dimension_semantics<parallel>], iteration_bounds = array<i64: 2>, scalar_prefetch = 0 : i64, scratch_operands = 0 : i64, tpu.core_type = #tpu.core_type<tc>, window_params = [{transform_indices = @transform_0, window_bounds = array<i64: 1, 24, 64>}, {pipeline_mode = #tpu.pipeline_mode<synchronous>, transform_indices = @transform_1, window_bounds = array<i64: 3, 64, 128>}, {pipeline_mode = #tpu.pipeline_mode<synchronous>, transform_indices = @transform_2, window_bounds = array<i64: 1, 128>}, {transform_indices = @transform_3, window_bounds = array<i64: 1, 16, 128>}]} {
    %c0 = arith.constant 0 : index
    %c0_0 = arith.constant 0 : index
    %c0_1 = arith.constant 0 : index
    %0 = vector.load %arg1[%c0, %c0_0, %c0_1] : memref<1x24x64xf32, #tpu.memory_space<vmem>>, vector<1x24x64xf32>
    %c0_2 = arith.constant 0 : index
    %c0_3 = arith.constant 0 : index
    %c0_4 = arith.constant 0 : index
    %1 = vector.load %arg2[%c0_2, %c0_3, %c0_4] : memref<3x64x128xf32, #tpu.memory_space<vmem>>, vector<3x64x128xf32>
    %cst = arith.constant 0.000000e+00 : f32
    %2 = vector.broadcast %cst : f32 to vector<16x128xf32>
    %3 = vector.extract_strided_slice %0 {offsets = [0, 0, 0], sizes = [1, 16, 64], strides = [1, 1, 1]} : vector<1x24x64xf32> to vector<1x16x64xf32>
    %4 = vector.shape_cast %3 : vector<1x16x64xf32> to vector<16x64xf32>
    %5 = vector.extract_strided_slice %1 {offsets = [0, 0, 0], sizes = [1, 64, 128], strides = [1, 1, 1]} : vector<3x64x128xf32> to vector<1x64x128xf32>
    %6 = vector.shape_cast %5 : vector<1x64x128xf32> to vector<64x128xf32>
    %cst_5 = arith.constant dense<0.000000e+00> : vector<16x128xf32>
    %7 = tpu.matmul %4, %6, %cst_5 {dimension_numbers = #tpu.dot_dimension_numbers<[1], [0], [0], [1], [0, 0, 1, 1], [], []>} : vector<16x64xf32>, vector<64x128xf32>, vector<16x128xf32> -> vector<16x128xf32>
    %8 = arith.addf %2, %7 : vector<16x128xf32>
    %9 = vector.extract_strided_slice %0 {offsets = [0, 4, 0], sizes = [1, 16, 64], strides = [1, 1, 1]} : vector<1x24x64xf32> to vector<1x16x64xf32>
    %10 = vector.shape_cast %9 : vector<1x16x64xf32> to vector<16x64xf32>
    %11 = vector.extract_strided_slice %1 {offsets = [1, 0, 0], sizes = [1, 64, 128], strides = [1, 1, 1]} : vector<3x64x128xf32> to vector<1x64x128xf32>
    %12 = vector.shape_cast %11 : vector<1x64x128xf32> to vector<64x128xf32>
    %cst_6 = arith.constant dense<0.000000e+00> : vector<16x128xf32>
    %13 = tpu.matmul %10, %12, %cst_6 {dimension_numbers = #tpu.dot_dimension_numbers<[1], [0], [0], [1], [0, 0, 1, 1], [], []>} : vector<16x64xf32>, vector<64x128xf32>, vector<16x128xf32> -> vector<16x128xf32>
    %14 = arith.addf %8, %13 : vector<16x128xf32>
    %15 = vector.extract_strided_slice %0 {offsets = [0, 8, 0], sizes = [1, 16, 64], strides = [1, 1, 1]} : vector<1x24x64xf32> to vector<1x16x64xf32>
    %16 = vector.shape_cast %15 : vector<1x16x64xf32> to vector<16x64xf32>
    %17 = vector.extract_strided_slice %1 {offsets = [2, 0, 0], sizes = [1, 64, 128], strides = [1, 1, 1]} : vector<3x64x128xf32> to vector<1x64x128xf32>
    %18 = vector.shape_cast %17 : vector<1x64x128xf32> to vector<64x128xf32>
    %cst_7 = arith.constant dense<0.000000e+00> : vector<16x128xf32>
    %19 = tpu.matmul %16, %18, %cst_7 {dimension_numbers = #tpu.dot_dimension_numbers<[1], [0], [0], [1], [0, 0, 1, 1], [], []>} : vector<16x64xf32>, vector<64x128xf32>, vector<16x128xf32> -> vector<16x128xf32>
    %20 = arith.addf %14, %19 : vector<16x128xf32>
    %c0_8 = arith.constant 0 : index
    %c0_9 = arith.constant 0 : index
    %21 = vector.load %arg3[%c0_8, %c0_9] : memref<1x128xf32, #tpu.memory_space<vmem>>, vector<1x128xf32>
    %22 = vector.broadcast %21 : vector<1x128xf32> to vector<16x128xf32>
    %23 = arith.addf %20, %22 : vector<16x128xf32>
    %cst_10 = arith.constant 0.000000e+00 : f32
    %24 = vector.broadcast %cst_10 : f32 to vector<16x128xf32>
    %25 = arith.maximumf %23, %24 : vector<16x128xf32>
    %26 = vector.shape_cast %25 : vector<16x128xf32> to vector<1x16x128xf32>
    %c0_11 = arith.constant 0 : index
    %c0_12 = arith.constant 0 : index
    %c0_13 = arith.constant 0 : index
    %27 = vector.load %arg4[%c0_11, %c0_12, %c0_13] : memref<1x16x128xf32, #tpu.memory_space<vmem>>, vector<1x16x128xf32>
    tpu.vector_store %arg4[%c0_11, %c0_12, %c0_13], %26 {strides = array<i32>} : memref<1x16x128xf32, #tpu.memory_space<vmem>>, vector<1x16x128xf32>,
    return
  }
  func.func @transform_0(%arg0: i32) -> (i32, i32, i32) {
    %c0_i32 = arith.constant 0 : i32
    %c0_i32_0 = arith.constant 0 : i32
    %c0_i32_1 = arith.constant 0 : i32
    return %arg0, %c0_i32, %c0_i32_0 : i32, i32, i32
  }
  func.func @transform_1(%arg0: i32) -> (i32, i32, i32) {
    %c0_i32 = arith.constant 0 : i32
    %c0_i32_0 = arith.constant 0 : i32
    %c0_i32_1 = arith.constant 0 : i32
    %c0_i32_2 = arith.constant 0 : i32
    return %c0_i32, %c0_i32_0, %c0_i32_1 : i32, i32, i32
  }
  func.func @transform_2(%arg0: i32) -> (i32, i32) {
    %c0_i32 = arith.constant 0 : i32
    %c0_i32_0 = arith.constant 0 : i32
    %c0_i32_1 = arith.constant 0 : i32
    return %c0_i32, %c0_i32_0 : i32, i32
  }
  func.func @transform_3(%arg0: i32) -> (i32, i32, i32) {
    %c0_i32 = arith.constant 0 : i32
    %c0_i32_0 = arith.constant 0 : i32
    %c0_i32_1 = arith.constant 0 : i32
    return %arg0, %c0_i32, %c0_i32_0 : i32, i32, i32
  }
}

module attributes {stable_mosaic.version = 11 : i64} {
  func.func @kernel(%arg0: i32, %arg1: memref<1x16x64xf32, #tpu.memory_space<vmem>>, %arg2: memref<1x64x128xf32, #tpu.memory_space<vmem>>, %arg3: memref<1x128xf32, #tpu.memory_space<vmem>>, %arg4: memref<1x16x128xf32, #tpu.memory_space<vmem>>) attributes {dimension_semantics = [#tpu.dimension_semantics<parallel>], iteration_bounds = array<i64: 2>, scalar_prefetch = 0 : i64, scratch_operands = 0 : i64, tpu.core_type = #tpu.core_type<tc>, window_params = [{transform_indices = @transform_0, window_bounds = array<i64: 1, 16, 64>}, {pipeline_mode = #tpu.pipeline_mode<synchronous>, transform_indices = @transform_1, window_bounds = array<i64: 1, 64, 128>}, {pipeline_mode = #tpu.pipeline_mode<synchronous>, transform_indices = @transform_2, window_bounds = array<i64: 1, 128>}, {transform_indices = @transform_3, window_bounds = array<i64: 1, 16, 128>}]} {
    %c0 = arith.constant 0 : index
    %c0_0 = arith.constant 0 : index
    %c0_1 = arith.constant 0 : index
    %0 = vector.load %arg1[%c0, %c0_0, %c0_1] : memref<1x16x64xf32, #tpu.memory_space<vmem>>, vector<1x16x64xf32>
    %c0_2 = arith.constant 0 : index
    %c0_3 = arith.constant 0 : index
    %c0_4 = arith.constant 0 : index
    %1 = vector.load %arg2[%c0_2, %c0_3, %c0_4] : memref<1x64x128xf32, #tpu.memory_space<vmem>>, vector<1x64x128xf32>
    %cst = arith.constant 0.000000e+00 : f32
    %2 = vector.broadcast %cst : f32 to vector<16x128xf32>
    %3 = vector.shape_cast %0 : vector<1x16x64xf32> to vector<16x64xf32>
    %4 = vector.shape_cast %1 : vector<1x64x128xf32> to vector<64x128xf32>
    %cst_5 = arith.constant dense<0.000000e+00> : vector<16x128xf32>
    %5 = tpu.matmul %3, %4, %cst_5 {dimension_numbers = #tpu.dot_dimension_numbers<[1], [0], [0], [1], [0, 0, 1, 1], [], []>} : vector<16x64xf32>, vector<64x128xf32>, vector<16x128xf32> -> vector<16x128xf32>
    %6 = arith.addf %2, %5 : vector<16x128xf32>
    %c0_6 = arith.constant 0 : index
    %c0_7 = arith.constant 0 : index
    %7 = vector.load %arg3[%c0_6, %c0_7] : memref<1x128xf32, #tpu.memory_space<vmem>>, vector<1x128xf32>
    %8 = vector.broadcast %7 : vector<1x128xf32> to vector<16x128xf32>
    %9 = arith.addf %6, %8 : vector<16x128xf32>
    %10 = vector.shape_cast %9 : vector<16x128xf32> to vector<1x16x128xf32>
    %c0_8 = arith.constant 0 : index
    %c0_9 = arith.constant 0 : index
    %c0_10 = arith.constant 0 : index
    %11 = vector.load %arg4[%c0_8, %c0_9, %c0_10] : memref<1x16x128xf32, #tpu.memory_space<vmem>>, vector<1x16x128xf32>
    tpu.vector_store %arg4[%c0_8, %c0_9, %c0_10], %10 {strides = array<i32>} : memref<1x16x128xf32, #tpu.memory_space<vmem>>, vector<1x16x128xf32>,
    return
  }
  func.func @transform_0(%arg0: i32) -> (i32, i32, i32) {
    %c0_i32 = arith.constant 0 : i32
    %c0_i32_0 = arith.constant 0 : i32
    %c0_i32_1 = arith.constant 0 : i32
    return %arg0, %c0_i32, %c0_i32_0 : i32, i32, i32
  }
  func.func @transform_1(%arg0: i32) -> (i32, i32, i32) {
    %c0_i32 = arith.constant 0 : i32
    %c0_i32_0 = arith.constant 0 : i32
    %c0_i32_1 = arith.constant 0 : i32
    %c0_i32_2 = arith.constant 0 : i32
    return %c0_i32, %c0_i32_0, %c0_i32_1 : i32, i32, i32
  }
  func.func @transform_2(%arg0: i32) -> (i32, i32) {
    %c0_i32 = arith.constant 0 : i32
    %c0_i32_0 = arith.constant 0 : i32
    %c0_i32_1 = arith.constant 0 : i32
    return %c0_i32, %c0_i32_0 : i32, i32
  }
  func.func @transform_3(%arg0: i32) -> (i32, i32, i32) {
    %c0_i32 = arith.constant 0 : i32
    %c0_i32_0 = arith.constant 0 : i32
    %c0_i32_1 = arith.constant 0 : i32
    return %arg0, %c0_i32, %c0_i32_0 : i32, i32, i32
  }
}

module attributes {stable_mosaic.version = 11 : i64} {
  func.func @kernel(%arg0: i32, %arg1: memref<1x24x128xf32, #tpu.memory_space<vmem>>, %arg2: memref<3x128x128xf32, #tpu.memory_space<vmem>>, %arg3: memref<1x128xf32, #tpu.memory_space<vmem>>, %arg4: memref<1x16x128xf32, #tpu.memory_space<vmem>>, %arg5: memref<1x16x128xf32, #tpu.memory_space<vmem>>) attributes {dimension_semantics = [#tpu.dimension_semantics<parallel>], iteration_bounds = array<i64: 2>, scalar_prefetch = 0 : i64, scratch_operands = 0 : i64, tpu.core_type = #tpu.core_type<tc>, window_params = [{transform_indices = @transform_0, window_bounds = array<i64: 1, 24, 128>}, {pipeline_mode = #tpu.pipeline_mode<synchronous>, transform_indices = @transform_1, window_bounds = array<i64: 3, 128, 128>}, {pipeline_mode = #tpu.pipeline_mode<synchronous>, transform_indices = @transform_2, window_bounds = array<i64: 1, 128>}, {transform_indices = @transform_3, window_bounds = array<i64: 1, 16, 128>}, {transform_indices = @transform_4, window_bounds = array<i64: 1, 16, 128>}]} {
    %c0 = arith.constant 0 : index
    %c0_0 = arith.constant 0 : index
    %c0_1 = arith.constant 0 : index
    %0 = vector.load %arg1[%c0, %c0_0, %c0_1] : memref<1x24x128xf32, #tpu.memory_space<vmem>>, vector<1x24x128xf32>
    %c0_2 = arith.constant 0 : index
    %c0_3 = arith.constant 0 : index
    %c0_4 = arith.constant 0 : index
    %1 = vector.load %arg2[%c0_2, %c0_3, %c0_4] : memref<3x128x128xf32, #tpu.memory_space<vmem>>, vector<3x128x128xf32>
    %cst = arith.constant 0.000000e+00 : f32
    %2 = vector.broadcast %cst : f32 to vector<16x128xf32>
    %3 = vector.extract_strided_slice %0 {offsets = [0, 0, 0], sizes = [1, 16, 128], strides = [1, 1, 1]} : vector<1x24x128xf32> to vector<1x16x128xf32>
    %4 = vector.shape_cast %3 : vector<1x16x128xf32> to vector<16x128xf32>
    %5 = vector.extract_strided_slice %1 {offsets = [0, 0, 0], sizes = [1, 128, 128], strides = [1, 1, 1]} : vector<3x128x128xf32> to vector<1x128x128xf32>
    %6 = vector.shape_cast %5 : vector<1x128x128xf32> to vector<128x128xf32>
    %cst_5 = arith.constant dense<0.000000e+00> : vector<16x128xf32>
    %7 = tpu.matmul %4, %6, %cst_5 {dimension_numbers = #tpu.dot_dimension_numbers<[1], [0], [0], [1], [0, 0, 1, 1], [], []>} : vector<16x128xf32>, vector<128x128xf32>, vector<16x128xf32> -> vector<16x128xf32>
    %8 = arith.addf %2, %7 : vector<16x128xf32>
    %9 = vector.extract_strided_slice %0 {offsets = [0, 4, 0], sizes = [1, 16, 128], strides = [1, 1, 1]} : vector<1x24x128xf32> to vector<1x16x128xf32>
    %10 = vector.shape_cast %9 : vector<1x16x128xf32> to vector<16x128xf32>
    %11 = vector.extract_strided_slice %1 {offsets = [1, 0, 0], sizes = [1, 128, 128], strides = [1, 1, 1]} : vector<3x128x128xf32> to vector<1x128x128xf32>
    %12 = vector.shape_cast %11 : vector<1x128x128xf32> to vector<128x128xf32>
    %cst_6 = arith.constant dense<0.000000e+00> : vector<16x128xf32>
    %13 = tpu.matmul %10, %12, %cst_6 {dimension_numbers = #tpu.dot_dimension_numbers<[1], [0], [0], [1], [0, 0, 1, 1], [], []>} : vector<16x128xf32>, vector<128x128xf32>, vector<16x128xf32> -> vector<16x128xf32>
    %14 = arith.addf %8, %13 : vector<16x128xf32>
    %15 = vector.extract_strided_slice %0 {offsets = [0, 8, 0], sizes = [1, 16, 128], strides = [1, 1, 1]} : vector<1x24x128xf32> to vector<1x16x128xf32>
    %16 = vector.shape_cast %15 : vector<1x16x128xf32> to vector<16x128xf32>
    %17 = vector.extract_strided_slice %1 {offsets = [2, 0, 0], sizes = [1, 128, 128], strides = [1, 1, 1]} : vector<3x128x128xf32> to vector<1x128x128xf32>
    %18 = vector.shape_cast %17 : vector<1x128x128xf32> to vector<128x128xf32>
    %cst_7 = arith.constant dense<0.000000e+00> : vector<16x128xf32>
    %19 = tpu.matmul %16, %18, %cst_7 {dimension_numbers = #tpu.dot_dimension_numbers<[1], [0], [0], [1], [0, 0, 1, 1], [], []>} : vector<16x128xf32>, vector<128x128xf32>, vector<16x128xf32> -> vector<16x128xf32>
    %20 = arith.addf %14, %19 : vector<16x128xf32>
    %c0_8 = arith.constant 0 : index
    %c0_9 = arith.constant 0 : index
    %21 = vector.load %arg3[%c0_8, %c0_9] : memref<1x128xf32, #tpu.memory_space<vmem>>, vector<1x128xf32>
    %22 = vector.broadcast %21 : vector<1x128xf32> to vector<16x128xf32>
    %23 = arith.addf %20, %22 : vector<16x128xf32>
    %cst_10 = arith.constant 0.000000e+00 : f32
    %24 = vector.broadcast %cst_10 : f32 to vector<16x128xf32>
    %25 = arith.maximumf %23, %24 : vector<16x128xf32>
    %c0_11 = arith.constant 0 : index
    %c0_12 = arith.constant 0 : index
    %c0_13 = arith.constant 0 : index
    %26 = vector.load %arg4[%c0_11, %c0_12, %c0_13] : memref<1x16x128xf32, #tpu.memory_space<vmem>>, vector<1x16x128xf32>
    %27 = vector.shape_cast %26 : vector<1x16x128xf32> to vector<16x128xf32>
    %28 = arith.addf %25, %27 : vector<16x128xf32>
    %cst_14 = arith.constant 0.000000e+00 : f32
    %29 = vector.broadcast %cst_14 : f32 to vector<16x128xf32>
    %30 = arith.maximumf %28, %29 : vector<16x128xf32>
    %31 = vector.shape_cast %30 : vector<16x128xf32> to vector<1x16x128xf32>
    %c0_15 = arith.constant 0 : index
    %c0_16 = arith.constant 0 : index
    %c0_17 = arith.constant 0 : index
    %32 = vector.load %arg5[%c0_15, %c0_16, %c0_17] : memref<1x16x128xf32, #tpu.memory_space<vmem>>, vector<1x16x128xf32>
    tpu.vector_store %arg5[%c0_15, %c0_16, %c0_17], %31 {strides = array<i32>} : memref<1x16x128xf32, #tpu.memory_space<vmem>>, vector<1x16x128xf32>,
    return
  }
  func.func @transform_0(%arg0: i32) -> (i32, i32, i32) {
    %c0_i32 = arith.constant 0 : i32
    %c0_i32_0 = arith.constant 0 : i32
    %c0_i32_1 = arith.constant 0 : i32
    return %arg0, %c0_i32, %c0_i32_0 : i32, i32, i32
  }
  func.func @transform_1(%arg0: i32) -> (i32, i32, i32) {
    %c0_i32 = arith.constant 0 : i32
    %c0_i32_0 = arith.constant 0 : i32
    %c0_i32_1 = arith.constant 0 : i32
    %c0_i32_2 = arith.constant 0 : i32
    return %c0_i32, %c0_i32_0, %c0_i32_1 : i32, i32, i32
  }
  func.func @transform_2(%arg0: i32) -> (i32, i32) {
    %c0_i32 = arith.constant 0 : i32
    %c0_i32_0 = arith.constant 0 : i32
    %c0_i32_1 = arith.constant 0 : i32
    return %c0_i32, %c0_i32_0 : i32, i32
  }
  func.func @transform_3(%arg0: i32) -> (i32, i32, i32) {
    %c0_i32 = arith.constant 0 : i32
    %c0_i32_0 = arith.constant 0 : i32
    %c0_i32_1 = arith.constant 0 : i32
    return %arg0, %c0_i32, %c0_i32_0 : i32, i32, i32
  }
  func.func @transform_4(%arg0: i32) -> (i32, i32, i32) {
    %c0_i32 = arith.constant 0 : i32
    %c0_i32_0 = arith.constant 0 : i32
    %c0_i32_1 = arith.constant 0 : i32
    return %arg0, %c0_i32, %c0_i32_0 : i32, i32, i32
  }
}

module attributes {stable_mosaic.version = 11 : i64} {
  func.func @_pool_fc_kernel(%arg0: i32, %arg1: memref<2x16x128xf32, #tpu.memory_space<vmem>>, %arg2: memref<128x2xf32, #tpu.memory_space<vmem>>, %arg3: memref<1x2xf32, #tpu.memory_space<vmem>>, %arg4: memref<2x2xf32, #tpu.memory_space<vmem>>) attributes {dimension_semantics = [#tpu.dimension_semantics<arbitrary>], iteration_bounds = array<i64: 1>, scalar_prefetch = 0 : i64, scratch_operands = 0 : i64, tpu.core_type = #tpu.core_type<tc>, window_params = [{pipeline_mode = #tpu.pipeline_mode<synchronous>, transform_indices = @transform_0, window_bounds = array<i64: 2, 16, 128>}, {pipeline_mode = #tpu.pipeline_mode<synchronous>, transform_indices = @transform_1, window_bounds = array<i64: 128, 2>}, {pipeline_mode = #tpu.pipeline_mode<synchronous>, transform_indices = @transform_2, window_bounds = array<i64: 1, 2>}, {pipeline_mode = #tpu.pipeline_mode<synchronous>, transform_indices = @transform_3, window_bounds = array<i64: 2, 2>}]} {
    %c0 = arith.constant 0 : index
    %c0_0 = arith.constant 0 : index
    %c0_1 = arith.constant 0 : index
    %0 = vector.load %arg1[%c0, %c0_0, %c0_1] : memref<2x16x128xf32, #tpu.memory_space<vmem>>, vector<2x16x128xf32>
    %cst = arith.constant dense<0.000000e+00> : vector<2x128xf32>
    %1 = vector.multi_reduction <add>, %0, %cst [1] : vector<2x16x128xf32> to vector<2x128xf32>
    %cst_2 = arith.constant 1.600000e+01 : f32
    %2 = vector.broadcast %cst_2 : f32 to vector<2x128xf32>
    %3 = arith.divf %1, %2 : vector<2x128xf32>
    %c0_3 = arith.constant 0 : index
    %c0_4 = arith.constant 0 : index
    %4 = vector.load %arg2[%c0_3, %c0_4] : memref<128x2xf32, #tpu.memory_space<vmem>>, vector<128x2xf32>
    %cst_5 = arith.constant dense<0.000000e+00> : vector<2x2xf32>
    %5 = tpu.matmul %3, %4, %cst_5 {dimension_numbers = #tpu.dot_dimension_numbers<[1], [0], [0], [1], [0, 0, 1, 1], [], []>} : vector<2x128xf32>, vector<128x2xf32>, vector<2x2xf32> -> vector<2x2xf32>
    %c0_6 = arith.constant 0 : index
    %c0_7 = arith.constant 0 : index
    %6 = vector.load %arg3[%c0_6, %c0_7] : memref<1x2xf32, #tpu.memory_space<vmem>>, vector<1x2xf32>
    %7 = vector.broadcast %6 : vector<1x2xf32> to vector<2x2xf32>
    %8 = arith.addf %5, %7 : vector<2x2xf32>
    %c0_8 = arith.constant 0 : index
    %c0_9 = arith.constant 0 : index
    %9 = vector.load %arg4[%c0_8, %c0_9] : memref<2x2xf32, #tpu.memory_space<vmem>>, vector<2x2xf32>
    tpu.vector_store %arg4[%c0_8, %c0_9], %8 {strides = array<i32>} : memref<2x2xf32, #tpu.memory_space<vmem>>, vector<2x2xf32>,
    return
  }
  func.func @transform_0(%arg0: i32) -> (i32, i32, i32) {
    %c0_i32 = arith.constant 0 : i32
    %c0_i32_0 = arith.constant 0 : i32
    %c0_i32_1 = arith.constant 0 : i32
    %c0_i32_2 = arith.constant 0 : i32
    return %c0_i32, %c0_i32_0, %c0_i32_1 : i32, i32, i32
  }
  func.func @transform_1(%arg0: i32) -> (i32, i32) {
    %c0_i32 = arith.constant 0 : i32
    %c0_i32_0 = arith.constant 0 : i32
    %c0_i32_1 = arith.constant 0 : i32
    return %c0_i32, %c0_i32_0 : i32, i32
  }
  func.func @transform_2(%arg0: i32) -> (i32, i32) {
    %c0_i32 = arith.constant 0 : i32
    %c0_i32_0 = arith.constant 0 : i32
    %c0_i32_1 = arith.constant 0 : i32
    return %c0_i32, %c0_i32_0 : i32, i32
  }
  func.func @transform_3(%arg0: i32) -> (i32, i32) {
    %c0_i32 = arith.constant 0 : i32
    %c0_i32_0 = arith.constant 0 : i32
    %c0_i32_1 = arith.constant 0 : i32
    return %c0_i32, %c0_i32_0 : i32, i32
  }
}

</mosaic_0001>

<bundles_post_ra>
// kernel: temporal_conv_net_forward.8
= control target key start
LH: loop header
LB: loop body
LE: loop exit
PB: predicated region body
PF: predicated region fallthrough
CT: control target
= control target key end

     0   :  { %s663_s12 = smov 0   ;;  %s776_s0 = inlined_call_operand.vmem [shape: f32[2,20,64], index: 0, kind: input, shape index: {}]   ;;  %s777_s1 = inlined_call_operand.vmem [shape: f32[3,64,64], index: 1, kind: input, shape index: {}]   ;;  %s778_s2 = inlined_call_operand.vmem [shape: f32[1,64], index: 2, kind: input, shape index: {}]   ;;  %s779_s3 = inlined_call_operand.vmem [shape: f32[2,16,64], index: 3, kind: output, shape index: {}]  }
   0x1 LB: > { %s521_s13 = sadd.s32 4294967295, %s641_s12   ;;  %p525_p0 = scmp.ge.s32.totalorder %s641_s12, 1  ;;  %s641_s12 = sphi %s663_s12, %s13_s12  }
   0x2   : > { %p137_p1 = scmp.lt.s32.totalorder %s641_s12, 3 }
   0x4   : > { %p138_p2 = pnand %p525_p0, %p137_p1 }
   0x5   : > { %p161_p3 = scmp.lt.s32.totalorder (!%p138_p2), %s521_s13, 1 }
   0x6   : > { %141 = sbr.rel (%p138_p2) target bundleno = 248 (0xf8), region = 32 }
   0xb   : > { %v189_v0 = vld [vmem:[%s777_s1 + $0x78] sm:$0xff]  ;;  %v188_v2 = vld [vmem:[%s777_s1 + $0x70] sm:$0xff]  ;;  %v187_v4 = vld [vmem:[%s777_s1 + $0x68] sm:$0xff]  ;;  %s781_s13 = smov (!%p161_p3, %s521_s13), 1  ;;  %vm201_vm0 = vcmask 1045504   ;;  %vm207_vm1 = vcmask 523264  }
   0xc   : > { %v181_v1 = vld [vmem:[%s777_s1 + $0x38] sm:$0xff]  ;;  %569 = vmatprep.subr.mxu0 %v189_v0  ;;  %v180_v3 = vld [vmem:[%s777_s1 + $0x30] sm:$0xff]  ;;  %v179_v5 = vld [vmem:[%s777_s1 + $0x28] sm:$0xff]  ;;  %s626_s30 = smul.u32 24, %s781_s13  ;;  %vm366_vm2 = vcmask 1043456   ;;  %s538_s18 = sshll.u32 %s781_s13, 4 }
   0xd   : > { %588 = vmatprep.subr.mxu1 %v181_v1  ;;  %570 = vmatpush3.msra.mxu0 %v189_v0  ;;  %v186_v6 = vld [vmem:[%s777_s1 + $0x60] sm:$0xff]  ;;  %v185_v8 = vld [vmem:[%s777_s1 + $0x58] sm:$0xff]  ;;  %v184_v12 = vld [vmem:[%s777_s1 + $0x50] sm:$0xff]  ;;  %s170_s21 = scalar_lea.vmem %s779_s3, %s538_s18 }
   0xe   : > { %589 = vmatpush3.msra.mxu1 %v181_v1  ;;  %571 = vmatprep.subr.mxu0 %v188_v2  ;;  %v178_v7 = vld [vmem:[%s777_s1 + $0x20] sm:$0xff]  ;;  %v177_v9 = vld [vmem:[%s777_s1 + $0x18] sm:$0xff]  ;;  %s165_s10 = scalar_lea.vmem %s776_s0, %s626_s30  ;;  %v176_v13 = vld [vmem:[%s777_s1 + $0x10] sm:$0xff] }
   0xf   : > { %590 = vmatprep.subr.mxu1 %v180_v3  ;;  %572 = vmatpush3.msra.mxu0 %v188_v2  ;;  %v171_v10 = vld [vmem:[%s165_s10] sm:$0xff]  ;;  %v707_v11 = vld [vmem:[%s165_s10 + $0x8] sm:$0xff]  ;;  %v173_v14 = vld [vmem:[%s165_s10 + $0x10] sm:$0xf] }
  0x10   : > { %591 = vmatpush3.msra.mxu1 %v180_v3  ;;  %573 = vmatprep.subr.mxu0 %v187_v4  ;;  %v202_v15 = vrot.slane %v171_v10, 2  ;;  %v203_v16 = vrot.slane %v707_v11, 2  ;;  %v183_v17 = vld [vmem:[%s777_s1 + $0x48] sm:$0xff]  ;;  %v205_v19 = vrot.slane %v173_v14, 2  ;;  %v182_v20 = vld [vmem:[%s777_s1 + $0x40] sm:$0xff]  ;;  %v367_v22 = vrot.slane %v171_v10, 4 }
  0x11   : > { %592 = vmatprep.subr.mxu1 %v179_v5  ;;  %574 = vmatpush3.msra.mxu0 %v187_v4  ;;  %v175_v18 = vld [vmem:[%s777_s1 + $0x8] sm:$0xff]  ;;  %v174_v21 = vld [vmem:[%s777_s1] sm:$0xff]  ;;  %v368_v23 = vrot.slane %v707_v11, 4  ;;  %v197_v26 = vld [vmem:[%s777_s1 + $0xb8] sm:$0xff]  ;;  %v370_v33 = vrot.slane %v173_v14, 4 }
  0x12   : > { %593 = vmatpush3.msra.mxu1 %v179_v5  ;;  %575 = vmatprep.subr.mxu0 %v186_v6  ;;  %v204_v24 = vsel %vm201_vm0, %v202_v15, %v203_v16  ;;  %v206_v25 = vsel %vm201_vm0, %v203_v16, %v205_v19  ;;  %v196_v28 = vld [vmem:[%s777_s1 + $0xb0] sm:$0xff]  ;;  %v195_v29 = vld [vmem:[%s777_s1 + $0xa8] sm:$0xff]  ;;  %v194_v30 = vld [vmem:[%s777_s1 + $0xa0] sm:$0xff] }
  0x13   : > { %594 = vmatprep.subr.mxu1 %v178_v7  ;;  %576 = vmatpush3.msra.mxu0 %v186_v6  ;;  %v369_v27 = vsel %vm366_vm2, %v367_v22, %v368_v23  ;;  %v193_v31 = vld [vmem:[%s777_s1 + $0x98] sm:$0xff]  ;;  %v192_v32 = vld [vmem:[%s777_s1 + $0x90] sm:$0xff]  ;;  %v191_v34 = vld [vmem:[%s777_s1 + $0x88] sm:$0xff]  ;;  %v371_v36 = vsel %vm366_vm2, %v368_v23, %v370_v33 }
  0x14   : > { %595 = vmatpush3.msra.mxu1 %v178_v7  ;;  %577 = vmatprep.subr.mxu0 %v185_v8  ;;  %v190_v35 = vld [vmem:[%s777_s1 + $0x80] sm:$0xff] }
  0x15   : > { %596 = vmatprep.subr.mxu1 %v177_v9  ;;  %578 = vmatpush3.msra.mxu0 %v185_v8  ;;  %v535_v43 = vld [vmem:[%s778_s2] ss:$0 sm:$0xff] }
  0x16   : > { %597 = vmatpush3.msra.mxu1 %v177_v9  ;;  %579 = vmatprep.subr.mxu0 %v184_v12 }
  0x17   : > { %598 = vmatprep.subr.mxu1 %v176_v13  ;;  %580 = vmatpush3.msra.mxu0 %v184_v12 }
  0x18   : > { %599 = vmatpush3.msra.mxu1 %v176_v13  ;;  %581 = vmatprep.subr.mxu0 %v183_v17 }
  0x19   : > { %600 = vmatprep.subr.mxu1 %v175_v18  ;;  %582 = vmatpush3.msra.mxu0 %v183_v17 }
  0x1a   : > { %601 = vmatpush3.msra.mxu1 %v175_v18  ;;  %583 = vmatprep.subr.mxu0 %v182_v20 }
  0x1b   : > { %602 = vmatprep.subr.mxu1 %v174_v21  ;;  %584 = vmatpush3.msra.mxu0 %v182_v20 }
  0x1c   : > { %585 = vmatprep.mubr.msk.f32.mxu0 %vm207_vm1, %v204_v24  ;;  %603 = vmatpush3.msra.mxu1 %v174_v21 }
  0x1d   : > { %604 = vmatprep.mubr.msk.f32.mxu1 %vm207_vm1, %v171_v10  ;;  %586 = vmatmul.mubr.msk.f32.vlgmr.msra.gmra.mxu0 %vm207_vm1, %v206_v25 }
  0x1e   : > { %605 = vmatmul.mubr.msk.f32.vlgmr.msra.gmra.mxu1 %vm207_vm1, %v707_v11  ;;  %607 = vmatprep.subr.mxu0 %v197_v26 }
  0x1f   : > { %623 = vmatprep.mubr.msk.f32.mxu0 %vm207_vm1, %v369_v27  ;;  %608 = vmatpush3.msra.mxu0 %v197_v26 }
  0x20   : > { %609 = vmatprep.subr.mxu0 %v196_v28 }
  0x21   : > { %610 = vmatpush3.msra.mxu0 %v196_v28 }
  0x22   : > { %611 = vmatprep.subr.mxu0 %v195_v29 }
  0x23   : > { %612 = vmatpush3.msra.mxu0 %v195_v29 }
  0x24   : > { %613 = vmatprep.subr.mxu0 %v194_v30 }
  0x25   : > { %614 = vmatpush3.msra.mxu0 %v194_v30 }
  0x26   : > { %615 = vmatprep.subr.mxu0 %v193_v31 }
  0x27   : > { %616 = vmatpush3.msra.mxu0 %v193_v31 }
  0x28   : > { %617 = vmatprep.subr.mxu0 %v192_v32 }
  0x29   : > { %618 = vmatpush3.msra.mxu0 %v192_v32 }
  0x2a   : > { %619 = vmatprep.subr.mxu0 %v191_v34 }
  0x2b   : > { %620 = vmatpush3.msra.mxu0 %v191_v34 }
  0x2c   : > { %621 = vmatprep.subr.mxu0 %v190_v35 }
  0x2d   : > { %622 = vmatpush3.msra.mxu0 %v190_v35 }
  0x2e   : > { %624 = vmatmul.mubr.msk.f32.vlgmr.msra.gmra.mxu0 %vm207_vm1, %v371_v36 }
  0xdd   : > { %v587_v37 = vpop.f32.mrf.mxu0 }
  0xde   : > { %v606_v38 = vpop.f32.mrf.mxu1 }
  0xdf   : > { %v278_v39 = vpop.f32.mrf.mxu0  ;;  %v363_v41 = vadd.f32 %v606_v38, %v587_v37 }
  0xe0   : > { %v357_v40 = vpop.f32.mrf.mxu1 }
  0xe1   : > { %v358_v44 = vadd.f32 %v357_v40, %v278_v39 }
  0xee   : > { %v625_v42 = vpop.f32.mrf.mxu0 }
  0xef   : > { %v452_v45 = vadd.f32 %v625_v42, %v363_v41 }
  0xf0   : > { %v442_v46 = vpop.f32.mrf.mxu0 }
  0xf1   : > { %v461_v47 = vadd.f32 %v535_v43, %v452_v45  ;;  %v451_v48 = vadd.f32 %v442_v46, %v358_v44 }
  0xf3   : > { %v463_v49 = vmax.f32 %v461_v47, 0.0  ;;  %v460_v50 = vadd.f32 %v535_v43, %v451_v48 }
  0xf5   : > { %465 = vst.msk [vmem:[%s170_s21 + $0x8] sm:$0xff] %vm207_vm1, %v463_v49  ;;  %v462_v51 = vmax.f32 %v460_v50, 0.0 }
  0xf7   : > { %464 = vst.msk [vmem:[%s170_s21] sm:$0xff] %vm207_vm1, %v462_v51 }
  0xf8 PF: > { %s13_s12 = sadd.s32 1, %s641_s12  }
  0xf9   : > { %p10_p4 = scmp.ge.s32.totalorder %s13_s12, 4  }
  0xfb   :  { %12 = sbr.rel (!%p10_p4) target bundleno = 1 (0x1), region = 62 }

// kernel: temporal_conv_net_forward.7
= control target key start
LH: loop header
LB: loop body
LE: loop exit
PB: predicated region body
PF: predicated region fallthrough
CT: control target
= control target key end

     0   :  { %s515_s12 = smov 0   ;;  %s567_s0 = inlined_call_operand.vmem [shape: f32[2,17,28], index: 0, kind: input, shape index: {}]   ;;  %s568_s1 = inlined_call_operand.vmem [shape: f32[2,28,64], index: 1, kind: input, shape index: {}]   ;;  %s569_s2 = inlined_call_operand.vmem [shape: f32[1,64], index: 2, kind: input, shape index: {}]   ;;  %s570_s3 = inlined_call_operand.vmem [shape: f32[2,16,64], index: 3, kind: output, shape index: {}]  }
   0x1 LB: > { %s426_s13 = sadd.s32 4294967295, %s493_s12   ;;  %p430_p0 = scmp.ge.s32.totalorder %s493_s12, 1  ;;  %s493_s12 = sphi %s515_s12, %s13_s12  }
   0x2   : > { %p137_p1 = scmp.lt.s32.totalorder %s493_s12, 3 }
   0x4   : > { %p138_p2 = pnand %p430_p0, %p137_p1 }
   0x5   : > { %p161_p3 = scmp.lt.s32.totalorder (!%p138_p2), %s426_s13, 1 }
   0x6   : > { %141 = sbr.rel (%p138_p2) target bundleno = 224 (0xe0), region = 32 }
   0xb   : > { %v177_v0 = vld [vmem:[%s568_s1 + $0x18] sm:$0xf]  ;;  %vm196_vm0 = vcmask 1043456   ;;  %v176_v2 = vld [vmem:[%s568_s1 + $0x10] sm:$0xff]  ;;  %v175_v4 = vld [vmem:[%s568_s1 + $0x8] sm:$0xff]  ;;  %s572_s13 = smov (!%p161_p3, %s426_s13), 1 }
   0xc   : > { %v181_v1 = vld [vmem:[%s568_s1 + $0x38] sm:$0xf]  ;;  %467 = vmatprep.subr.msk.mxu1 %vm196_vm0, %v177_v0  ;;  %v180_v3 = vld [vmem:[%s568_s1 + $0x30] sm:$0xff]  ;;  %v179_v5 = vld [vmem:[%s568_s1 + $0x28] sm:$0xff]  ;;  %s478_s30 = smul.u32 24, %s572_s13  ;;  %vm191_vm1 = vcmask 228352  }
   0xd   : > { %456 = vmatprep.subr.msk.mxu0 %vm196_vm0, %v181_v1  ;;  %468 = vmatpush3.msk.msra.mxu1 %vm196_vm0, %v177_v0  ;;  %v174_v6 = vld [vmem:[%s568_s1] sm:$0xff]  ;;  %vm185_vm2 = vcmask 1046528   ;;  %s443_s9 = sshll.u32 %s572_s13, 4  ;;  %vm368_vm3 = vcmask 523264  }
   0xe   : > { %457 = vmatpush3.msk.msra.mxu0 %vm196_vm0, %v181_v1  ;;  %469 = vmatprep.subr.mxu1 %v176_v2  ;;  %v178_v7 = vld [vmem:[%s568_s1 + $0x20] sm:$0xff]  ;;  %s165_s6 = scalar_lea.vmem %s567_s0, %s478_s30  ;;  %s170_s14 = scalar_lea.vmem %s570_s3, %s443_s9 }
   0xf   : > { %458 = vmatprep.subr.mxu0 %v180_v3  ;;  %470 = vmatpush3.msra.mxu1 %v176_v2  ;;  %v171_v8 = vld [vmem:[%s165_s6] sm:$0xff]  ;;  %v173_v9 = vld [vmem:[%s165_s6 + $0x10] sm:$0x1]  ;;  %v172_v10 = vld [vmem:[%s165_s6 + $0x8] sm:$0xff] }
  0x10   : > { %459 = vmatpush3.msra.mxu0 %v180_v3  ;;  %471 = vmatprep.subr.mxu1 %v175_v4  ;;  %v186_v11 = vrot.slane %v171_v8, 1  ;;  %v189_v12 = vrot.slane %v173_v9, 1  ;;  %v187_v13 = vrot.slane %v172_v10, 1  ;;  %v440_v18 = vld [vmem:[%s569_s2] ss:$0 sm:$0xff] }
  0x11   : > { %460 = vmatprep.subr.mxu0 %v179_v5  ;;  %472 = vmatpush3.msra.mxu1 %v175_v4 }
  0x12   : > { %461 = vmatpush3.msra.mxu0 %v179_v5  ;;  %473 = vmatprep.subr.mxu1 %v174_v6  ;;  %v188_v14 = vsel %vm185_vm2, %v186_v11, %v187_v13  ;;  %v190_v15 = vsel %vm185_vm2, %v187_v13, %v189_v12 }
  0x13   : > { %462 = vmatprep.subr.mxu0 %v178_v7  ;;  %474 = vmatpush3.msra.mxu1 %v174_v6 }
  0x14   : > { %463 = vmatpush3.msra.mxu0 %v178_v7  ;;  %475 = vmatprep.mubr.msk.f32.mxu1 %vm191_vm1, %v171_v8 }
  0x15   : > { %476 = vmatmul.mubr.msk.f32.vlgmr.msra.gmra.mxu1 %vm191_vm1, %v172_v10  ;;  %464 = vmatprep.mubr.msk.f32.mxu0 %vm191_vm1, %v188_v14 }
  0x16   : > { %465 = vmatmul.mubr.msk.f32.vlgmr.msra.gmra.mxu0 %vm191_vm1, %v190_v15 }
  0xd5   : > { %v477_v16 = vpop.f32.mrf.mxu1 }
  0xd6   : > { %v466_v17 = vpop.f32.mrf.mxu0 }
  0xd7   : > { %v354_v19 = vadd.f32 %v477_v16, %v466_v17  ;;  %v348_v20 = vpop.f32.mrf.mxu1 }
  0xd8   : > { %v266_v21 = vpop.f32.mrf.mxu0 }
  0xd9   : > { %v365_v22 = vadd.f32 %v440_v18, %v354_v19  ;;  %v349_v23 = vadd.f32 %v348_v20, %v266_v21 }
  0xdb   : > { %v367_v24 = vmax.f32 %v365_v22, 0.0  ;;  %v364_v25 = vadd.f32 %v440_v18, %v349_v23 }
  0xdd   : > { %370 = vst.msk [vmem:[%s170_s14 + $0x8] sm:$0xff] %vm368_vm3, %v367_v24  ;;  %v366_v26 = vmax.f32 %v364_v25, 0.0 }
  0xdf   : > { %369 = vst.msk [vmem:[%s170_s14] sm:$0xff] %vm368_vm3, %v366_v26 }
  0xe0 PF: > { %s13_s12 = sadd.s32 1, %s493_s12  }
  0xe1   : > { %p10_p4 = scmp.ge.s32.totalorder %s13_s12, 4  }
  0xe3   :  { %12 = sbr.rel (!%p10_p4) target bundleno = 1 (0x1), region = 62 }

// kernel: temporal_conv_net_forward.9
= control target key start
LH: loop header
LB: loop body
LE: loop exit
PB: predicated region body
PF: predicated region fallthrough
CT: control target
= control target key end

     0   :  { %s736_s15 = smov 0   ;;  %s852_s0 = inlined_call_operand.vmem [shape: f32[2,20,64], index: 0, kind: input, shape index: {}]   ;;  %s853_s1 = inlined_call_operand.vmem [shape: f32[3,64,64], index: 1, kind: input, shape index: {}]   ;;  %s854_s2 = inlined_call_operand.vmem [shape: f32[1,64], index: 2, kind: input, shape index: {}]   ;;  %s855_s3 = inlined_call_operand.vmem [shape: f32[2,16,64], index: 3, kind: input, shape index: {}]   ;;  %s856_s4 = inlined_call_operand.vmem [shape: f32[2,16,64], index: 4, kind: output, shape index: {}]  }
   0x1 LB: > { %s586_s16 = sadd.s32 4294967295, %s709_s15   ;;  %p590_p0 = scmp.ge.s32.totalorder %s709_s15, 1  ;;  %s709_s15 = sphi %s736_s15, %s14_s15  }
   0x2   : > { %p172_p1 = scmp.lt.s32.totalorder %s709_s15, 3 }
   0x4   : > { %p173_p2 = pnand %p590_p0, %p172_p1 }
   0x5   : > { %p203_p3 = scmp.lt.s32.totalorder (!%p173_p2), %s586_s16, 1 }
   0x6   : > { %176 = sbr.rel (%p173_p2) target bundleno = 252 (0xfc), region = 36 }
   0xb   : > { %v236_v0 = vld [vmem:[%s853_s1 + $0x78] sm:$0xff]  ;;  %v235_v2 = vld [vmem:[%s853_s1 + $0x70] sm:$0xff]  ;;  %v234_v4 = vld [vmem:[%s853_s1 + $0x68] sm:$0xff]  ;;  %s858_s16 = smov (!%p203_p3, %s586_s16), 1  ;;  %vm248_vm0 = vcmask 1045504   ;;  %vm254_vm1 = vcmask 523264  }
   0xc   : > { %v228_v1 = vld [vmem:[%s853_s1 + $0x38] sm:$0xff]  ;;  %637 = vmatprep.subr.mxu0 %v236_v0  ;;  %v227_v3 = vld [vmem:[%s853_s1 + $0x30] sm:$0xff]  ;;  %v226_v5 = vld [vmem:[%s853_s1 + $0x28] sm:$0xff]  ;;  %s694_s7 = smul.u32 24, %s858_s16  ;;  %vm413_vm2 = vcmask 1043456   ;;  %s605_s21 = sshll.u32 %s858_s16, 4 }
   0xd   : > { %656 = vmatprep.subr.mxu1 %v228_v1  ;;  %638 = vmatpush3.msra.mxu0 %v236_v0  ;;  %v233_v6 = vld [vmem:[%s853_s1 + $0x60] sm:$0xff]  ;;  %v232_v8 = vld [vmem:[%s853_s1 + $0x58] sm:$0xff]  ;;  %v231_v12 = vld [vmem:[%s853_s1 + $0x50] sm:$0xff]  ;;  %s212_s26 = scalar_lea.vmem %s855_s3, %s605_s21  ;;  %s217_s28 = scalar_lea.vmem %s856_s4, %s605_s21 }
   0xe   : > { %657 = vmatpush3.msra.mxu1 %v228_v1  ;;  %639 = vmatprep.subr.mxu0 %v235_v2  ;;  %v225_v7 = vld [vmem:[%s853_s1 + $0x20] sm:$0xff]  ;;  %v224_v9 = vld [vmem:[%s853_s1 + $0x18] sm:$0xff]  ;;  %s207_s14 = scalar_lea.vmem %s852_s0, %s694_s7  ;;  %v223_v13 = vld [vmem:[%s853_s1 + $0x10] sm:$0xff] }
   0xf   : > { %658 = vmatprep.subr.mxu1 %v227_v3  ;;  %640 = vmatpush3.msra.mxu0 %v235_v2  ;;  %v218_v10 = vld [vmem:[%s207_s14] sm:$0xff]  ;;  %v780_v11 = vld [vmem:[%s207_s14 + $0x8] sm:$0xff]  ;;  %v220_v14 = vld [vmem:[%s207_s14 + $0x10] sm:$0xf] }
  0x10   : > { %659 = vmatpush3.msra.mxu1 %v227_v3  ;;  %641 = vmatprep.subr.mxu0 %v234_v4  ;;  %v249_v15 = vrot.slane %v218_v10, 2  ;;  %v250_v16 = vrot.slane %v780_v11, 2  ;;  %v230_v17 = vld [vmem:[%s853_s1 + $0x48] sm:$0xff]  ;;  %v252_v19 = vrot.slane %v220_v14, 2  ;;  %v229_v20 = vld [vmem:[%s853_s1 + $0x40] sm:$0xff]  ;;  %v414_v22 = vrot.slane %v218_v10, 4 }
  0x11   : > { %660 = vmatprep.subr.mxu1 %v226_v5  ;;  %642 = vmatpush3.msra.mxu0 %v234_v4  ;;  %v222_v18 = vld [vmem:[%s853_s1 + $0x8] sm:$0xff]  ;;  %v221_v21 = vld [vmem:[%s853_s1] sm:$0xff]  ;;  %v415_v23 = vrot.slane %v780_v11, 4  ;;  %v244_v26 = vld [vmem:[%s853_s1 + $0xb8] sm:$0xff]  ;;  %v417_v33 = vrot.slane %v220_v14, 4 }
  0x12   : > { %661 = vmatpush3.msra.mxu1 %v226_v5  ;;  %643 = vmatprep.subr.mxu0 %v233_v6  ;;  %v251_v24 = vsel %vm248_vm0, %v249_v15, %v250_v16  ;;  %v253_v25 = vsel %vm248_vm0, %v250_v16, %v252_v19  ;;  %v243_v28 = vld [vmem:[%s853_s1 + $0xb0] sm:$0xff]  ;;  %v242_v29 = vld [vmem:[%s853_s1 + $0xa8] sm:$0xff]  ;;  %v241_v30 = vld [vmem:[%s853_s1 + $0xa0] sm:$0xff] }
  0x13   : > { %662 = vmatprep.subr.mxu1 %v225_v7  ;;  %644 = vmatpush3.msra.mxu0 %v233_v6  ;;  %v416_v27 = vsel %vm413_vm2, %v414_v22, %v415_v23  ;;  %v240_v31 = vld [vmem:[%s853_s1 + $0x98] sm:$0xff]  ;;  %v239_v32 = vld [vmem:[%s853_s1 + $0x90] sm:$0xff]  ;;  %v238_v34 = vld [vmem:[%s853_s1 + $0x88] sm:$0xff]  ;;  %v418_v36 = vsel %vm413_vm2, %v415_v23, %v417_v33 }
  0x14   : > { %663 = vmatpush3.msra.mxu1 %v225_v7  ;;  %645 = vmatprep.subr.mxu0 %v232_v8  ;;  %v237_v35 = vld [vmem:[%s853_s1 + $0x80] sm:$0xff]  ;;  %v512_v49 = vld [vmem:[%s212_s26 + $0x8] sm:$0xff] }
  0x15   : > { %664 = vmatprep.subr.mxu1 %v224_v9  ;;  %646 = vmatpush3.msra.mxu0 %v232_v8  ;;  %v602_v43 = vld [vmem:[%s854_s2] ss:$0 sm:$0xff] }
  0x16   : > { %665 = vmatpush3.msra.mxu1 %v224_v9  ;;  %647 = vmatprep.subr.mxu0 %v231_v12  ;;  %v511_v52 = vld [vmem:[%s212_s26] sm:$0xff] }
  0x17   : > { %666 = vmatprep.subr.mxu1 %v223_v13  ;;  %648 = vmatpush3.msra.mxu0 %v231_v12 }
  0x18   : > { %667 = vmatpush3.msra.mxu1 %v223_v13  ;;  %649 = vmatprep.subr.mxu0 %v230_v17 }
  0x19   : > { %668 = vmatprep.subr.mxu1 %v222_v18  ;;  %650 = vmatpush3.msra.mxu0 %v230_v17 }
  0x1a   : > { %669 = vmatpush3.msra.mxu1 %v222_v18  ;;  %651 = vmatprep.subr.mxu0 %v229_v20 }
  0x1b   : > { %670 = vmatprep.subr.mxu1 %v221_v21  ;;  %652 = vmatpush3.msra.mxu0 %v229_v20 }
  0x1c   : > { %653 = vmatprep.mubr.msk.f32.mxu0 %vm254_vm1, %v251_v24  ;;  %671 = vmatpush3.msra.mxu1 %v221_v21 }
  0x1d   : > { %672 = vmatprep.mubr.msk.f32.mxu1 %vm254_vm1, %v218_v10  ;;  %654 = vmatmul.mubr.msk.f32.vlgmr.msra.gmra.mxu0 %vm254_vm1, %v253_v25 }
  0x1e   : > { %673 = vmatmul.mubr.msk.f32.vlgmr.msra.gmra.mxu1 %vm254_vm1, %v780_v11  ;;  %675 = vmatprep.subr.mxu0 %v244_v26 }
  0x1f   : > { %691 = vmatprep.mubr.msk.f32.mxu0 %vm254_vm1, %v416_v27  ;;  %676 = vmatpush3.msra.mxu0 %v244_v26 }
  0x20   : > { %677 = vmatprep.subr.mxu0 %v243_v28 }
  0x21   : > { %678 = vmatpush3.msra.mxu0 %v243_v28 }
  0x22   : > { %679 = vmatprep.subr.mxu0 %v242_v29 }
  0x23   : > { %680 = vmatpush3.msra.mxu0 %v242_v29 }
  0x24   : > { %681 = vmatprep.subr.mxu0 %v241_v30 }
  0x25   : > { %682 = vmatpush3.msra.mxu0 %v241_v30 }
  0x26   : > { %683 = vmatprep.subr.mxu0 %v240_v31 }
  0x27   : > { %684 = vmatpush3.msra.mxu0 %v240_v31 }
  0x28   : > { %685 = vmatprep.subr.mxu0 %v239_v32 }
  0x29   : > { %686 = vmatpush3.msra.mxu0 %v239_v32 }
  0x2a   : > { %687 = vmatprep.subr.mxu0 %v238_v34 }
  0x2b   : > { %688 = vmatpush3.msra.mxu0 %v238_v34 }
  0x2c   : > { %689 = vmatprep.subr.mxu0 %v237_v35 }
  0x2d   : > { %690 = vmatpush3.msra.mxu0 %v237_v35 }
  0x2e   : > { %692 = vmatmul.mubr.msk.f32.vlgmr.msra.gmra.mxu0 %vm254_vm1, %v418_v36 }
  0xdd   : > { %v655_v37 = vpop.f32.mrf.mxu0 }
  0xde   : > { %v674_v38 = vpop.f32.mrf.mxu1 }
  0xdf   : > { %v325_v39 = vpop.f32.mrf.mxu0  ;;  %v410_v41 = vadd.f32 %v674_v38, %v655_v37 }
  0xe0   : > { %v404_v40 = vpop.f32.mrf.mxu1 }
  0xe1   : > { %v405_v44 = vadd.f32 %v404_v40, %v325_v39 }
  0xee   : > { %v693_v42 = vpop.f32.mrf.mxu0 }
  0xef   : > { %v499_v45 = vadd.f32 %v693_v42, %v410_v41 }
  0xf0   : > { %v489_v46 = vpop.f32.mrf.mxu0 }
  0xf1   : > { %v508_v47 = vadd.f32 %v602_v43, %v499_v45  ;;  %v498_v48 = vadd.f32 %v489_v46, %v405_v44 }
  0xf3   : > { %v510_v50 = vmax.f32 %v508_v47, 0.0  ;;  %v507_v51 = vadd.f32 %v602_v43, %v498_v48 }
  0xf5   : > { %v514_v53 = vadd.f32 %v512_v49, %v510_v50  ;;  %v509_v54 = vmax.f32 %v507_v51, 0.0 }
  0xf7   : > { %v516_v55 = vmax.f32 %v514_v53, 0.0  ;;  %v513_v56 = vadd.f32 %v511_v52, %v509_v54 }
  0xf9   : > { %518 = vst.msk [vmem:[%s217_s28 + $0x8] sm:$0xff] %vm254_vm1, %v516_v55  ;;  %v515_v57 = vmax.f32 %v513_v56, 0.0 }
  0xfb   : > { %517 = vst.msk [vmem:[%s217_s28] sm:$0xff] %vm254_vm1, %v515_v57 }
  0xfc PF: > { %s14_s15 = sadd.s32 1, %s709_s15  }
  0xfd   : > { %p11_p4 = scmp.ge.s32.totalorder %s14_s15, 4  }
  0xff   :  { %13 = sbr.rel (!%p11_p4) target bundleno = 1 (0x1), region = 69 }

// kernel: temporal_conv_net_forward.11
= control target key start
LH: loop header
LB: loop body
LE: loop exit
PB: predicated region body
PF: predicated region fallthrough
CT: control target
= control target key end

     0   :  { %s655_s12 = smov 0   ;;  %s759_s0 = inlined_call_operand.vmem [shape: f32[2,24,64], index: 0, kind: input, shape index: {}]   ;;  %s760_s1 = inlined_call_operand.vmem [shape: f32[3,64,128], index: 1, kind: input, shape index: {}]   ;;  %s761_s2 = inlined_call_operand.vmem [shape: f32[1,128], index: 2, kind: input, shape index: {}]   ;;  %s762_s3 = inlined_call_operand.vmem [shape: f32[2,16,128], index: 3, kind: output, shape index: {}]  }
   0x1 LB: > { %s513_s13 = sadd.s32 4294967295, %s633_s12   ;;  %p517_p0 = scmp.ge.s32.totalorder %s633_s12, 1  ;;  %s633_s12 = sphi %s655_s12, %s13_s12  }
   0x2   : > { %p137_p1 = scmp.lt.s32.totalorder %s633_s12, 3 }
   0x4   : > { %p138_p2 = pnand %p517_p0, %p137_p1 }
   0x5   : > { %p161_p3 = scmp.lt.s32.totalorder (!%p138_p2), %s513_s13, 1 }
   0x6   : > { %141 = sbr.rel (%p138_p2) target bundleno = 248 (0xf8), region = 32 }
   0xb   : > { %v189_v0 = vld [vmem:[%s760_s1 + $0x78] sm:$0xff]  ;;  %v188_v2 = vld [vmem:[%s760_s1 + $0x70] sm:$0xff]  ;;  %v187_v4 = vld [vmem:[%s760_s1 + $0x68] sm:$0xff]  ;;  %s764_s13 = smov (!%p161_p3, %s513_s13), 1  ;;  %vm201_vm0 = vcmask 1043456   ;;  %vm207_vm1 = vcmask 523264  }
   0xc   : > { %v181_v1 = vld [vmem:[%s760_s1 + $0x38] sm:$0xff]  ;;  %561 = vmatprep.subr.mxu0 %v189_v0  ;;  %v180_v3 = vld [vmem:[%s760_s1 + $0x30] sm:$0xff]  ;;  %v179_v5 = vld [vmem:[%s760_s1 + $0x28] sm:$0xff]  ;;  %s618_s30 = smul.u32 24, %s764_s13  ;;  %s530_s18 = sshll.u32 %s764_s13, 4 }
   0xd   : > { %580 = vmatprep.subr.mxu1 %v181_v1  ;;  %562 = vmatpush3.msra.mxu0 %v189_v0  ;;  %v186_v6 = vld [vmem:[%s760_s1 + $0x60] sm:$0xff]  ;;  %v185_v8 = vld [vmem:[%s760_s1 + $0x58] sm:$0xff]  ;;  %v184_v12 = vld [vmem:[%s760_s1 + $0x50] sm:$0xff]  ;;  %s170_s21 = scalar_lea.vmem %s762_s3, %s530_s18 }
   0xe   : > { %581 = vmatpush3.msra.mxu1 %v181_v1  ;;  %563 = vmatprep.subr.mxu0 %v188_v2  ;;  %v178_v7 = vld [vmem:[%s760_s1 + $0x20] sm:$0xff]  ;;  %v177_v9 = vld [vmem:[%s760_s1 + $0x18] sm:$0xff]  ;;  %s165_s10 = scalar_lea.vmem %s759_s0, %s618_s30  ;;  %v176_v13 = vld [vmem:[%s760_s1 + $0x10] sm:$0xff] }
   0xf   : > { %582 = vmatprep.subr.mxu1 %v180_v3  ;;  %564 = vmatpush3.msra.mxu0 %v188_v2  ;;  %v171_v10 = vld [vmem:[%s165_s10] sm:$0xff]  ;;  %v172_v11 = vld [vmem:[%s165_s10 + $0x8] sm:$0xff]  ;;  %v173_v14 = vld [vmem:[%s165_s10 + $0x10] sm:$0xff] }
  0x10   : > { %583 = vmatpush3.msra.mxu1 %v180_v3  ;;  %565 = vmatprep.subr.mxu0 %v187_v4  ;;  %v202_v15 = vrot.slane %v171_v10, 4  ;;  %v203_v16 = vrot.slane %v172_v11, 4  ;;  %v183_v17 = vld [vmem:[%s760_s1 + $0x48] sm:$0xff]  ;;  %v205_v19 = vrot.slane %v173_v14, 4  ;;  %v182_v20 = vld [vmem:[%s760_s1 + $0x40] sm:$0xff]  ;;  %v197_v24 = vld [vmem:[%s760_s1 + $0xb8] sm:$0xff] }
  0x11   : > { %584 = vmatprep.subr.mxu1 %v179_v5  ;;  %566 = vmatpush3.msra.mxu0 %v187_v4  ;;  %v175_v18 = vld [vmem:[%s760_s1 + $0x8] sm:$0xff]  ;;  %v174_v21 = vld [vmem:[%s760_s1] sm:$0xff]  ;;  %v196_v25 = vld [vmem:[%s760_s1 + $0xb0] sm:$0xff] }
  0x12   : > { %585 = vmatpush3.msra.mxu1 %v179_v5  ;;  %567 = vmatprep.subr.mxu0 %v186_v6  ;;  %v204_v22 = vsel %vm201_vm0, %v202_v15, %v203_v16  ;;  %v206_v23 = vsel %vm201_vm0, %v203_v16, %v205_v19  ;;  %v195_v26 = vld [vmem:[%s760_s1 + $0xa8] sm:$0xff]  ;;  %v194_v27 = vld [vmem:[%s760_s1 + $0xa0] sm:$0xff]  ;;  %v193_v28 = vld [vmem:[%s760_s1 + $0x98] sm:$0xff] }
  0x13   : > { %586 = vmatprep.subr.mxu1 %v178_v7  ;;  %568 = vmatpush3.msra.mxu0 %v186_v6  ;;  %v192_v29 = vld [vmem:[%s760_s1 + $0x90] sm:$0xff]  ;;  %v191_v30 = vld [vmem:[%s760_s1 + $0x88] sm:$0xff]  ;;  %v190_v31 = vld [vmem:[%s760_s1 + $0x80] sm:$0xff] }
  0x14   : > { %587 = vmatpush3.msra.mxu1 %v178_v7  ;;  %569 = vmatprep.subr.mxu0 %v185_v8  ;;  %v527_v38 = vld [vmem:[%s761_s2] ss:$0 sm:$0xff] }
  0x15   : > { %588 = vmatprep.subr.mxu1 %v177_v9  ;;  %570 = vmatpush3.msra.mxu0 %v185_v8 }
  0x16   : > { %589 = vmatpush3.msra.mxu1 %v177_v9  ;;  %571 = vmatprep.subr.mxu0 %v184_v12 }
  0x17   : > { %590 = vmatprep.subr.mxu1 %v176_v13  ;;  %572 = vmatpush3.msra.mxu0 %v184_v12 }
  0x18   : > { %591 = vmatpush3.msra.mxu1 %v176_v13  ;;  %573 = vmatprep.subr.mxu0 %v183_v17 }
  0x19   : > { %592 = vmatprep.subr.mxu1 %v175_v18  ;;  %574 = vmatpush3.msra.mxu0 %v183_v17 }
  0x1a   : > { %593 = vmatpush3.msra.mxu1 %v175_v18  ;;  %575 = vmatprep.subr.mxu0 %v182_v20 }
  0x1b   : > { %594 = vmatprep.subr.mxu1 %v174_v21  ;;  %576 = vmatpush3.msra.mxu0 %v182_v20 }
  0x1c   : > { %577 = vmatprep.mubr.msk.f32.mxu0 %vm207_vm1, %v204_v22  ;;  %595 = vmatpush3.msra.mxu1 %v174_v21 }
  0x1d   : > { %596 = vmatprep.mubr.msk.f32.mxu1 %vm207_vm1, %v171_v10  ;;  %578 = vmatmul.mubr.msk.f32.vlgmr.msra.gmra.mxu0 %vm207_vm1, %v206_v23 }
  0x1e   : > { %597 = vmatmul.mubr.msk.f32.vlgmr.msra.gmra.mxu1 %vm207_vm1, %v172_v11  ;;  %599 = vmatprep.subr.mxu0 %v197_v24 }
  0x1f   : > { %615 = vmatprep.mubr.msk.f32.mxu0 %vm207_vm1, %v172_v11  ;;  %600 = vmatpush3.msra.mxu0 %v197_v24 }
  0x20   : > { %601 = vmatprep.subr.mxu0 %v196_v25 }
  0x21   : > { %602 = vmatpush3.msra.mxu0 %v196_v25 }
  0x22   : > { %603 = vmatprep.subr.mxu0 %v195_v26 }
  0x23   : > { %604 = vmatpush3.msra.mxu0 %v195_v26 }
  0x24   : > { %605 = vmatprep.subr.mxu0 %v194_v27 }
  0x25   : > { %606 = vmatpush3.msra.mxu0 %v194_v27 }
  0x26   : > { %607 = vmatprep.subr.mxu0 %v193_v28 }
  0x27   : > { %608 = vmatpush3.msra.mxu0 %v193_v28 }
  0x28   : > { %609 = vmatprep.subr.mxu0 %v192_v29 }
  0x29   : > { %610 = vmatpush3.msra.mxu0 %v192_v29 }
  0x2a   : > { %611 = vmatprep.subr.mxu0 %v191_v30 }
  0x2b   : > { %612 = vmatpush3.msra.mxu0 %v191_v30 }
  0x2c   : > { %613 = vmatprep.subr.mxu0 %v190_v31 }
  0x2d   : > { %614 = vmatpush3.msra.mxu0 %v190_v31 }
  0x2e   : > { %616 = vmatmul.mubr.msk.f32.vlgmr.msra.gmra.mxu0 %vm207_vm1, %v173_v14 }
  0xdd   : > { %v579_v32 = vpop.f32.mrf.mxu0 }
  0xde   : > { %v598_v33 = vpop.f32.mrf.mxu1 }
  0xdf   : > { %v278_v34 = vpop.f32.mrf.mxu0  ;;  %v363_v36 = vadd.f32 %v598_v33, %v579_v32 }
  0xe0   : > { %v357_v35 = vpop.f32.mrf.mxu1 }
  0xe1   : > { %v358_v39 = vadd.f32 %v357_v35, %v278_v34 }
  0xee   : > { %v617_v37 = vpop.f32.mrf.mxu0 }
  0xef   : > { %v444_v40 = vadd.f32 %v617_v37, %v363_v36 }
  0xf0   : > { %v434_v41 = vpop.f32.mrf.mxu0 }
  0xf1   : > { %v453_v42 = vadd.f32 %v527_v38, %v444_v40  ;;  %v443_v43 = vadd.f32 %v434_v41, %v358_v39 }
  0xf3   : > { %v455_v44 = vmax.f32 %v453_v42, 0.0  ;;  %v452_v45 = vadd.f32 %v527_v38, %v443_v43 }
  0xf5   : > { %457 = vst [vmem:[%s170_s21 + $0x8] sm:$0xff] %v455_v44  ;;  %v454_v46 = vmax.f32 %v452_v45, 0.0 }
  0xf7   : > { %456 = vst [vmem:[%s170_s21] sm:$0xff] %v454_v46 }
  0xf8 PF: > { %s13_s12 = sadd.s32 1, %s633_s12  }
  0xf9   : > { %p10_p4 = scmp.ge.s32.totalorder %s13_s12, 4  }
  0xfb   :  { %12 = sbr.rel (!%p10_p4) target bundleno = 1 (0x1), region = 62 }

// kernel: temporal_conv_net_forward.10
= control target key start
LH: loop header
LB: loop body
LE: loop exit
PB: predicated region body
PF: predicated region fallthrough
CT: control target
= control target key end

     0   :  { %s408_s12 = smov 0   ;;  %s457_s0 = inlined_call_operand.vmem [shape: f32[2,16,64], index: 0, kind: input, shape index: {}]   ;;  %s458_s1 = inlined_call_operand.vmem [shape: f32[1,64,128], index: 1, kind: input, shape index: {}]   ;;  %s459_s2 = inlined_call_operand.vmem [shape: f32[1,128], index: 2, kind: input, shape index: {}]   ;;  %s460_s3 = inlined_call_operand.vmem [shape: f32[2,16,128], index: 3, kind: output, shape index: {}]  }
   0x1 LB: > { %s327_s13 = sadd.s32 4294967295, %s386_s12   ;;  %p331_p0 = scmp.ge.s32.totalorder %s386_s12, 1  ;;  %s386_s12 = sphi %s408_s12, %s13_s12  }
   0x2   : > { %p137_p1 = scmp.lt.s32.totalorder %s386_s12, 3 }
   0x4   : > { %p138_p2 = pnand %p331_p0, %p137_p1 }
   0x5   : > { %p161_p3 = scmp.lt.s32.totalorder (!%p138_p2), %s327_s13, 1 }
   0x6   : > { %141 = sbr.rel (%p138_p2) target bundleno = 226 (0xe2), region = 32 }
   0xb   : > { %v180_v0 = vld [vmem:[%s458_s1 + $0x38] sm:$0xff]  ;;  %v179_v1 = vld [vmem:[%s458_s1 + $0x30] sm:$0xff]  ;;  %v178_v2 = vld [vmem:[%s458_s1 + $0x28] sm:$0xff]  ;;  %s462_s13 = smov (!%p161_p3, %s327_s13), 1  ;;  %vm188_vm0 = vcmask 523264  }
   0xc   : > { %353 = vmatprep.subr.mxu0 %v180_v0  ;;  %v177_v3 = vld [vmem:[%s458_s1 + $0x20] sm:$0xff]  ;;  %s341_s22 = sshll.u32 %s462_s13, 4  ;;  %v176_v4 = vld [vmem:[%s458_s1 + $0x18] sm:$0xff]  ;;  %v175_v6 = vld [vmem:[%s458_s1 + $0x10] sm:$0xff] }
   0xd   : > { %354 = vmatpush3.msra.mxu0 %v180_v0  ;;  %s165_s25 = scalar_lea.vmem %s457_s0, %s341_s22  ;;  %v174_v7 = vld [vmem:[%s458_s1 + $0x8] sm:$0xff]  ;;  %v173_v8 = vld [vmem:[%s458_s1] sm:$0xff]  ;;  %s170_s11 = scalar_lea.vmem %s460_s3, %s341_s22 }
   0xe   : > { %355 = vmatprep.subr.mxu0 %v179_v1  ;;  %v171_v5 = vld [vmem:[%s165_s25] sm:$0xff]  ;;  %v172_v9 = vld [vmem:[%s165_s25 + $0x8] sm:$0xff] }
   0xf   : > { %356 = vmatpush3.msra.mxu0 %v179_v1  ;;  %369 = vmatprep.mubr.msk.f32.mxu0 %vm188_vm0, %v171_v5  ;;  %v336_v10 = vld [vmem:[%s459_s2] ss:$0 sm:$0xff] }
  0x10   : > { %357 = vmatprep.subr.mxu0 %v178_v2 }
  0x11   : > { %358 = vmatpush3.msra.mxu0 %v178_v2 }
  0x12   : > { %359 = vmatprep.subr.mxu0 %v177_v3 }
  0x13   : > { %360 = vmatpush3.msra.mxu0 %v177_v3 }
  0x14   : > { %361 = vmatprep.subr.mxu0 %v176_v4 }
  0x15   : > { %362 = vmatpush3.msra.mxu0 %v176_v4 }
  0x16   : > { %363 = vmatprep.subr.mxu0 %v175_v6 }
  0x17   : > { %364 = vmatpush3.msra.mxu0 %v175_v6 }
  0x18   : > { %365 = vmatprep.subr.mxu0 %v174_v7 }
  0x19   : > { %366 = vmatpush3.msra.mxu0 %v174_v7 }
  0x1a   : > { %367 = vmatprep.subr.mxu0 %v173_v8 }
  0x1b   : > { %368 = vmatpush3.msra.mxu0 %v173_v8 }
  0x1c   : > { %370 = vmatmul.mubr.msk.f32.vlgmr.msra.gmra.mxu0 %vm188_vm0, %v172_v9 }
  0xdc   : > { %v371_v11 = vpop.f32.mrf.mxu0 }
  0xdd   : > { %v267_v12 = vadd.f32 %v371_v11, %v336_v10 }
  0xde   : > { %v261_v13 = vpop.f32.mrf.mxu0 }
  0xdf   : > { %271 = vst [vmem:[%s170_s11 + $0x8] sm:$0xff] %v267_v12  ;;  %v262_v14 = vadd.f32 %v336_v10, %v261_v13 }
  0xe1   : > { %270 = vst [vmem:[%s170_s11] sm:$0xff] %v262_v14 }
  0xe2 PF: > { %s13_s12 = sadd.s32 1, %s386_s12  }
  0xe3   : > { %p10_p4 = scmp.ge.s32.totalorder %s13_s12, 4  }
  0xe5   :  { %12 = sbr.rel (!%p10_p4) target bundleno = 1 (0x1), region = 62 }

// kernel: temporal_conv_net_forward.13
= control target key start
LH: loop header
LB: loop body
LE: loop exit
PB: predicated region body
PF: predicated region fallthrough
CT: control target
= control target key end

     0   :  { %v228_v1 = vmov 0.0   ;;  %vm229_vm0 = vmmov 0   ;;  %s334_s0 = inlined_call_operand.vmem [shape: f32[2,16,128], index: 0, kind: input, shape index: {}]   ;;  %s335_s1 = inlined_call_operand.vmem [shape: f32[128,2], index: 1, kind: input, shape index: {}]   ;;  %s336_s2 = inlined_call_operand.vmem [shape: f32[1,2], index: 2, kind: input, shape index: {}]   ;;  %s337_s3 = inlined_call_operand.hbm [shape: f32[2,2], index: 3, kind: output, shape index: {}]  }
   0x1   :  { %v51_v0 = vld [vmem:[%s335_s1 + $0x78] sm:$0xff]  ;;  %168 = vmatprep.subr.mxu0 %v228_v1  ;;  %v50_v2 = vld [vmem:[%s335_s1 + $0x70] sm:$0xff]  ;;  %200 = vmatprep.mubr.msk.f32.mxu0 %vm229_vm0, %v228_v1  ;;  %v49_v3 = vld [vmem:[%s335_s1 + $0x68] sm:$0xff] }
   0x2   :  { %169 = vmatpush3.msra.mxu0 %v51_v0  ;;  %v48_v4 = vld [vmem:[%s335_s1 + $0x60] sm:$0xff]  ;;  %v16_v6 = vld [vmem:[%s334_s0 + $0x8] sm:$0xff]  ;;  %v17_v7 = vld [vmem:[%s334_s0 + $0x10] sm:$0xff] }
   0x3   :  { %170 = vmatprep.subr.mxu0 %v228_v1  ;;  %v15_v5 = vld [vmem:[%s334_s0] sm:$0xff]  ;;  %v18_v8 = vld [vmem:[%s334_s0 + $0x18] sm:$0xff] }
   0x4   :  { %171 = vmatpush3.msra.mxu0 %v50_v2  ;;  %v19_v9 = vadd.f32 %v16_v6, %v15_v5  ;;  %v47_v10 = vld [vmem:[%s335_s1 + $0x58] sm:$0xff]  ;;  %v26_v11 = vadd.f32 %v18_v8, %v17_v7 }
   0x5   :  { %172 = vmatprep.subr.mxu0 %v228_v1 }
   0x6   :  { %173 = vmatpush3.msra.mxu0 %v49_v3 }
   0x7   :  { %174 = vmatprep.subr.mxu0 %v228_v1 }
   0x8   :  { %8 = vsyncpa [#allocation3], 0  ;;  %175 = vmatpush3.msra.mxu0 %v48_v4  ;;  %v20_v12 = vrot.slane %v19_v9, 4  ;;  %v46_v13 = vld [vmem:[%s335_s1 + $0x50] sm:$0xff]  ;;  %v27_v14 = vrot.slane %v26_v11, 4  ;;  %v45_v16 = vld [vmem:[%s335_s1 + $0x48] sm:$0xff] }
   0x9   :  { %176 = vmatprep.subr.mxu0 %v228_v1  ;;  %v44_v19 = vld [vmem:[%s335_s1 + $0x40] sm:$0xff]  ;;  %v43_v22 = vld [vmem:[%s335_s1 + $0x38] sm:$0xff]  ;;  %v42_v24 = vld [vmem:[%s335_s1 + $0x30] sm:$0xff]  ;;  %vm61_vm1 = vcmask 1041409   ;;  %s230_s26 = smov [#allocation2]   ;;  %vm134_vm2 = vcmask 9216  }
   0xa   :  { %177 = vmatpush3.msra.mxu0 %v47_v10  ;;  %v21_v15 = vadd.f32 %v20_v12, %v19_v9  ;;  %v28_v17 = vadd.f32 %v27_v14, %v26_v11  ;;  %v41_v27 = vld [vmem:[%s335_s1 + $0x28] sm:$0xff]  ;;  %v40_v28 = vld [vmem:[%s335_s1 + $0x20] sm:$0xff]  ;;  %v39_v31 = vld [vmem:[%s335_s1 + $0x18] sm:$0xff]  ;;  %s142_s27 = sshll.u32 %s230_s26, 4  ;;  %s143_s27 = int_to_ptr.vmem [resolvable:$true] %s142_s27 }
   0xb   :  { %178 = vmatprep.subr.mxu0 %v228_v1  ;;  %v38_v32 = vld [vmem:[%s335_s1 + $0x10] sm:$0xff]  ;;  %v37_v35 = vld [vmem:[%s335_s1 + $0x8] sm:$0xff]  ;;  %v36_v36 = vld [vmem:[%s335_s1] sm:$0xff]  ;;  %s206_s28 = scalar_lea.vmem %s143_s27, 32  ;;  %p211_p1 = scmp.lt.s32.totalorder %s143_s27, %s143_s27 }
   0xc   :  { %179 = vmatpush3.msra.mxu0 %v46_v13  ;;  %v22_v18 = vrot.slane %v21_v15, 2  ;;  %v29_v20 = vrot.slane %v28_v17, 2  ;;  %v150_v38 = vld [vmem:[%s336_s2] ss:$0 sm:$0xff]  ;;  %p207_p0 = scmp.ne.s32.totalorder %s143_s27, %s206_s28  ;;  %p212_p2 = scmp.lt.s32.totalorder %s206_s28, %s206_s28 }
   0xd   :  { %180 = vmatprep.subr.mxu0 %v228_v1 }
   0xe   :  { %181 = vmatpush3.msra.mxu0 %v45_v16  ;;  %v23_v21 = vadd.f32 %v22_v18, %v21_v15  ;;  %v30_v23 = vadd.f32 %v29_v20, %v28_v17  ;;  %p213_p3 = por %p212_p2, %p211_p1 }
   0xf   :  { %182 = vmatprep.subr.mxu0 %v228_v1 }
  0x10   :  { %183 = vmatpush3.msra.mxu0 %v44_v19  ;;  %v24_v25 = vrot.slane %v23_v21, 1  ;;  %v31_v26 = vrot.slane %v30_v23, 1  ;;  %p214_p4 = pnand %p213_p3, %p207_p0 }
  0x11   :  { %184 = vmatprep.subr.mxu0 %v228_v1 }
  0x12   :  { %185 = vmatpush3.msra.mxu0 %v43_v22  ;;  %v25_v29 = vadd.f32 %v24_v25, %v23_v21  ;;  %v32_v30 = vadd.f32 %v31_v26, %v30_v23 }
  0x13   :  { %186 = vmatprep.subr.mxu0 %v228_v1 }
  0x14   :  { %187 = vmatpush3.msra.mxu0 %v42_v24  ;;  %v34_v33 = vmul.f32 0.0625, %v25_v29  ;;  %v35_v34 = vmul.f32 0.0625, %v32_v30 }
  0x15   :  { %188 = vmatprep.subr.mxu0 %v228_v1 }
  0x16   :  { %189 = vmatpush3.msra.mxu0 %v41_v27  ;;  %v62_v37 = vsel %vm61_vm1, %v35_v34, %v34_v33 }
  0x17   :  { %190 = vmatprep.subr.mxu0 %v228_v1 }
  0x18   :  { %191 = vmatpush3.msra.mxu0 %v40_v28 }
  0x19   :  { %192 = vmatprep.subr.mxu0 %v228_v1 }
  0x1a   :  { %193 = vmatpush3.msra.mxu0 %v39_v31 }
  0x1b   :  { %194 = vmatprep.subr.mxu0 %v228_v1 }
  0x1c   :  { %195 = vmatpush3.msra.mxu0 %v38_v32 }
  0x1d   :  { %196 = vmatprep.subr.mxu0 %v228_v1 }
  0x1e   :  { %197 = vmatpush3.msra.mxu0 %v37_v35 }
  0x1f   :  { %198 = vmatprep.subr.mxu0 %v228_v1 }
  0x20   :  { %199 = vmatpush3.msra.mxu0 %v36_v36 }
  0x21   :  { %201 = vmatmul.mubr.f32.vlgmr.msra.gmra.mxu0 %v62_v37 }
  0xe1   :  { %v130_v39 = vpop.f32.mrf.mxu0 }
  0xe2   :  { %v131_v40 = vadd.f32 %v150_v38, %v130_v39 }
  0xe3   :  { %v202_v41 = vpop.f32.mrf.mxu0 }
  0xe4   :  { %135 = vst.msk [vmem:[#allocation2] sm:$0x3] %vm134_vm2, %v131_v40 }
  0xe5   :  { %217 = shalt.err (!%p214_p4)
}
  0xe6   :  { %145 = dma.vmem_to_hbm [thread:$0]  %s143_s27, 32, %s337_s3, [#allocation3]  }
  0xe7   :  { %226 = dma.done.wait [#allocation3], 32  }
  0xe8   :  { %227 = vsyncadd [#allocation3], 4294967264 }
  0xe9   :  { %149 = vsyncpa [#allocation3], 1 }

// kernel: temporal_conv_net_forward.12
= control target key start
LH: loop header
LB: loop body
LE: loop exit
PB: predicated region body
PF: predicated region fallthrough
CT: control target
= control target key end

     0   :  { %s809_s15 = smov 0   ;;  %s988_s0 = inlined_call_operand.vmem [shape: f32[2,24,128], index: 0, kind: input, shape index: {}]   ;;  %s989_s1 = inlined_call_operand.vmem [shape: f32[3,128,128], index: 1, kind: input, shape index: {}]   ;;  %s990_s2 = inlined_call_operand.vmem [shape: f32[1,128], index: 2, kind: input, shape index: {}]   ;;  %s991_s3 = inlined_call_operand.vmem [shape: f32[2,16,128], index: 3, kind: input, shape index: {}]   ;;  %s992_s4 = inlined_call_operand.vmem [shape: f32[2,16,128], index: 4, kind: output, shape index: {}]  }
   0x1 LB: > { %s593_s16 = sadd.s32 4294967295, %s782_s15   ;;  %p597_p0 = scmp.ge.s32.totalorder %s782_s15, 1  ;;  %s782_s15 = sphi %s809_s15, %s14_s15  }
   0x2   : > { %p172_p1 = scmp.lt.s32.totalorder %s782_s15, 3 }
   0x4   : > { %p173_p2 = pnand %p597_p0, %p172_p1 }
   0x5   : > { %p203_p3 = scmp.lt.s32.totalorder (!%p173_p2), %s593_s16, 1 }
   0x6   : > { %176 = sbr.rel (%p173_p2) target bundleno = 284 (0x11c), region = 36 }
   0xb   : > { %v252_v0 = vld [vmem:[%s989_s1 + $0xf8] sm:$0xff]  ;;  %v251_v2 = vld [vmem:[%s989_s1 + $0xf0] sm:$0xff]  ;;  %v250_v4 = vld [vmem:[%s989_s1 + $0xe8] sm:$0xff]  ;;  %s994_s16 = smov (!%p203_p3, %s593_s16), 1  ;;  %vm272_vm0 = vcmask 1043456  }
   0xc   : > { %v236_v1 = vld [vmem:[%s989_s1 + $0x78] sm:$0xff]  ;;  %662 = vmatprep.subr.mxu0 %v252_v0  ;;  %v235_v3 = vld [vmem:[%s989_s1 + $0x70] sm:$0xff]  ;;  %v234_v5 = vld [vmem:[%s989_s1 + $0x68] sm:$0xff]  ;;  %s767_s29 = smul.u32 24, %s994_s16  ;;  %s606_s21 = sshll.u32 %s994_s16, 4 }
   0xd   : > { %697 = vmatprep.subr.mxu1 %v236_v1  ;;  %663 = vmatpush3.msra.mxu0 %v252_v0  ;;  %v249_v6 = vld [vmem:[%s989_s1 + $0xe0] sm:$0xff]  ;;  %v248_v8 = vld [vmem:[%s989_s1 + $0xd8] sm:$0xff]  ;;  %v247_v10 = vld [vmem:[%s989_s1 + $0xd0] sm:$0xff]  ;;  %s212_s26 = scalar_lea.vmem %s991_s3, %s606_s21  ;;  %s217_s28 = scalar_lea.vmem %s992_s4, %s606_s21 }
   0xe   : > { %698 = vmatpush3.msra.mxu1 %v236_v1  ;;  %664 = vmatprep.subr.mxu0 %v251_v2  ;;  %v233_v7 = vld [vmem:[%s989_s1 + $0x60] sm:$0xff]  ;;  %v232_v9 = vld [vmem:[%s989_s1 + $0x58] sm:$0xff]  ;;  %v231_v11 = vld [vmem:[%s989_s1 + $0x50] sm:$0xff]  ;;  %s207_s14 = scalar_lea.vmem %s988_s0, %s767_s29 }
   0xf   : > { %699 = vmatprep.subr.mxu1 %v235_v3  ;;  %665 = vmatpush3.msra.mxu0 %v251_v2  ;;  %v246_v12 = vld [vmem:[%s989_s1 + $0xc8] sm:$0xff]  ;;  %v245_v14 = vld [vmem:[%s989_s1 + $0xc0] sm:$0xff]  ;;  %v244_v16 = vld [vmem:[%s989_s1 + $0xb8] sm:$0xff] }
  0x10   : > { %700 = vmatpush3.msra.mxu1 %v235_v3  ;;  %666 = vmatprep.subr.mxu0 %v250_v4  ;;  %v230_v13 = vld [vmem:[%s989_s1 + $0x48] sm:$0xff]  ;;  %v229_v15 = vld [vmem:[%s989_s1 + $0x40] sm:$0xff]  ;;  %v228_v17 = vld [vmem:[%s989_s1 + $0x38] sm:$0xff] }
  0x11   : > { %701 = vmatprep.subr.mxu1 %v234_v5  ;;  %667 = vmatpush3.msra.mxu0 %v250_v4  ;;  %v243_v18 = vld [vmem:[%s989_s1 + $0xb0] sm:$0xff]  ;;  %v242_v20 = vld [vmem:[%s989_s1 + $0xa8] sm:$0xff]  ;;  %v241_v22 = vld [vmem:[%s989_s1 + $0xa0] sm:$0xff] }
  0x12   : > { %702 = vmatpush3.msra.mxu1 %v234_v5  ;;  %668 = vmatprep.subr.mxu0 %v249_v6  ;;  %v227_v19 = vld [vmem:[%s989_s1 + $0x30] sm:$0xff]  ;;  %v226_v21 = vld [vmem:[%s989_s1 + $0x28] sm:$0xff]  ;;  %v225_v23 = vld [vmem:[%s989_s1 + $0x20] sm:$0xff] }
  0x13   : > { %703 = vmatprep.subr.mxu1 %v233_v7  ;;  %669 = vmatpush3.msra.mxu0 %v249_v6  ;;  %v240_v24 = vld [vmem:[%s989_s1 + $0x98] sm:$0xff]  ;;  %v218_v26 = vld [vmem:[%s207_s14] sm:$0xff]  ;;  %v219_v27 = vld [vmem:[%s207_s14 + $0x8] sm:$0xff] }
  0x14   : > { %704 = vmatpush3.msra.mxu1 %v233_v7  ;;  %670 = vmatprep.subr.mxu0 %v248_v8  ;;  %v224_v25 = vld [vmem:[%s989_s1 + $0x18] sm:$0xff]  ;;  %v239_v28 = vld [vmem:[%s989_s1 + $0x90] sm:$0xff]  ;;  %v273_v31 = vrot.slane %v218_v26, 4  ;;  %v274_v32 = vrot.slane %v219_v27, 4  ;;  %v238_v33 = vld [vmem:[%s989_s1 + $0x88] sm:$0xff] }
  0x15   : > { %705 = vmatprep.subr.mxu1 %v232_v9  ;;  %671 = vmatpush3.msra.mxu0 %v248_v8  ;;  %v223_v29 = vld [vmem:[%s989_s1 + $0x10] sm:$0xff]  ;;  %v222_v34 = vld [vmem:[%s989_s1 + $0x8] sm:$0xff]  ;;  %v237_v36 = vld [vmem:[%s989_s1 + $0x80] sm:$0xff] }
  0x16   : > { %706 = vmatpush3.msra.mxu1 %v232_v9  ;;  %672 = vmatprep.subr.mxu0 %v247_v10  ;;  %v911_v30 = vld [vmem:[%s207_s14 + $0x10] sm:$0xff]  ;;  %v221_v37 = vld [vmem:[%s989_s1] sm:$0xff]  ;;  %v275_v38 = vsel %vm272_vm0, %v273_v31, %v274_v32  ;;  %v268_v40 = vld [vmem:[%s989_s1 + $0x178] sm:$0xff] }
  0x17   : > { %707 = vmatprep.subr.mxu1 %v231_v11  ;;  %673 = vmatpush3.msra.mxu0 %v247_v10  ;;  %v276_v35 = vrot.slane %v911_v30, 4  ;;  %v267_v41 = vld [vmem:[%s989_s1 + $0x170] sm:$0xff]  ;;  %v266_v42 = vld [vmem:[%s989_s1 + $0x168] sm:$0xff]  ;;  %v265_v43 = vld [vmem:[%s989_s1 + $0x160] sm:$0xff] }
  0x18   : > { %708 = vmatpush3.msra.mxu1 %v231_v11  ;;  %674 = vmatprep.subr.mxu0 %v246_v12  ;;  %v264_v44 = vld [vmem:[%s989_s1 + $0x158] sm:$0xff]  ;;  %v263_v45 = vld [vmem:[%s989_s1 + $0x150] sm:$0xff]  ;;  %v262_v46 = vld [vmem:[%s989_s1 + $0x148] sm:$0xff] }
  0x19   : > { %709 = vmatprep.subr.mxu1 %v230_v13  ;;  %675 = vmatpush3.msra.mxu0 %v246_v12  ;;  %v277_v39 = vsel %vm272_vm0, %v274_v32, %v276_v35  ;;  %v261_v47 = vld [vmem:[%s989_s1 + $0x140] sm:$0xff]  ;;  %v260_v48 = vld [vmem:[%s989_s1 + $0x138] sm:$0xff]  ;;  %v259_v49 = vld [vmem:[%s989_s1 + $0x130] sm:$0xff] }
  0x1a   : > { %710 = vmatpush3.msra.mxu1 %v230_v13  ;;  %676 = vmatprep.subr.mxu0 %v245_v14  ;;  %v258_v50 = vld [vmem:[%s989_s1 + $0x128] sm:$0xff]  ;;  %v257_v51 = vld [vmem:[%s989_s1 + $0x120] sm:$0xff]  ;;  %v256_v52 = vld [vmem:[%s989_s1 + $0x118] sm:$0xff] }
  0x1b   : > { %711 = vmatprep.subr.mxu1 %v229_v15  ;;  %677 = vmatpush3.msra.mxu0 %v245_v14  ;;  %v255_v53 = vld [vmem:[%s989_s1 + $0x110] sm:$0xff]  ;;  %v254_v54 = vld [vmem:[%s989_s1 + $0x108] sm:$0xff]  ;;  %v253_v55 = vld [vmem:[%s989_s1 + $0x100] sm:$0xff] }
  0x1c   : > { %712 = vmatpush3.msra.mxu1 %v229_v15  ;;  %678 = vmatprep.subr.mxu0 %v244_v16  ;;  %v603_v62 = vld [vmem:[%s990_s2] ss:$0 sm:$0xff]  ;;  %v519_v4 = vld [vmem:[%s212_s26 + $0x8] sm:$0xff] }
  0x1d   : > { %713 = vmatprep.subr.mxu1 %v228_v17  ;;  %679 = vmatpush3.msra.mxu0 %v244_v16  ;;  %v518_v7 = vld [vmem:[%s212_s26] sm:$0xff] }
  0x1e   : > { %714 = vmatpush3.msra.mxu1 %v228_v17  ;;  %680 = vmatprep.subr.mxu0 %v243_v18 }
  0x1f   : > { %715 = vmatprep.subr.mxu1 %v227_v19  ;;  %681 = vmatpush3.msra.mxu0 %v243_v18 }
  0x20   : > { %716 = vmatpush3.msra.mxu1 %v227_v19  ;;  %682 = vmatprep.subr.mxu0 %v242_v20 }
  0x21   : > { %717 = vmatprep.subr.mxu1 %v226_v21  ;;  %683 = vmatpush3.msra.mxu0 %v242_v20 }
  0x22   : > { %718 = vmatpush3.msra.mxu1 %v226_v21  ;;  %684 = vmatprep.subr.mxu0 %v241_v22 }
  0x23   : > { %719 = vmatprep.subr.mxu1 %v225_v23  ;;  %685 = vmatpush3.msra.mxu0 %v241_v22 }
  0x24   : > { %720 = vmatpush3.msra.mxu1 %v225_v23  ;;  %686 = vmatprep.subr.mxu0 %v240_v24 }
  0x25   : > { %721 = vmatprep.subr.mxu1 %v224_v25  ;;  %687 = vmatpush3.msra.mxu0 %v240_v24 }
  0x26   : > { %722 = vmatpush3.msra.mxu1 %v224_v25  ;;  %688 = vmatprep.subr.mxu0 %v239_v28 }
  0x27   : > { %723 = vmatprep.subr.mxu1 %v223_v29  ;;  %689 = vmatpush3.msra.mxu0 %v239_v28 }
  0x28   : > { %724 = vmatpush3.msra.mxu1 %v223_v29  ;;  %690 = vmatprep.subr.mxu0 %v238_v33 }
  0x29   : > { %725 = vmatprep.subr.mxu1 %v222_v34  ;;  %691 = vmatpush3.msra.mxu0 %v238_v33 }
  0x2a   : > { %726 = vmatpush3.msra.mxu1 %v222_v34  ;;  %692 = vmatprep.subr.mxu0 %v237_v36 }
  0x2b   : > { %727 = vmatprep.subr.mxu1 %v221_v37  ;;  %693 = vmatpush3.msra.mxu0 %v237_v36 }
  0x2c   : > { %694 = vmatprep.mubr.f32.mxu0 %v275_v38  ;;  %728 = vmatpush3.msra.mxu1 %v221_v37 }
  0x2d   : > { %729 = vmatprep.mubr.f32.mxu1 %v218_v26  ;;  %695 = vmatmul.mubr.f32.vlgmr.msra.gmra.mxu0 %v277_v39 }
  0x2e   : > { %730 = vmatmul.mubr.f32.vlgmr.msra.gmra.mxu1 %v219_v27  ;;  %732 = vmatprep.subr.mxu0 %v268_v40 }
  0x2f   : > { %764 = vmatprep.mubr.f32.mxu0 %v219_v27  ;;  %733 = vmatpush3.msra.mxu0 %v268_v40 }
  0x30   : > { %734 = vmatprep.subr.mxu0 %v267_v41 }
  0x31   : > { %735 = vmatpush3.msra.mxu0 %v267_v41 }
  0x32   : > { %736 = vmatprep.subr.mxu0 %v266_v42 }
  0x33   : > { %737 = vmatpush3.msra.mxu0 %v266_v42 }
  0x34   : > { %738 = vmatprep.subr.mxu0 %v265_v43 }
  0x35   : > { %739 = vmatpush3.msra.mxu0 %v265_v43 }
  0x36   : > { %740 = vmatprep.subr.mxu0 %v264_v44 }
  0x37   : > { %741 = vmatpush3.msra.mxu0 %v264_v44 }
  0x38   : > { %742 = vmatprep.subr.mxu0 %v263_v45 }
  0x39   : > { %743 = vmatpush3.msra.mxu0 %v263_v45 }
  0x3a   : > { %744 = vmatprep.subr.mxu0 %v262_v46 }
  0x3b   : > { %745 = vmatpush3.msra.mxu0 %v262_v46 }
  0x3c   : > { %746 = vmatprep.subr.mxu0 %v261_v47 }
  0x3d   : > { %747 = vmatpush3.msra.mxu0 %v261_v47 }
  0x3e   : > { %748 = vmatprep.subr.mxu0 %v260_v48 }
  0x3f   : > { %749 = vmatpush3.msra.mxu0 %v260_v48 }
  0x40   : > { %750 = vmatprep.subr.mxu0 %v259_v49 }
  0x41   : > { %751 = vmatpush3.msra.mxu0 %v259_v49 }
  0x42   : > { %752 = vmatprep.subr.mxu0 %v258_v50 }
  0x43   : > { %753 = vmatpush3.msra.mxu0 %v258_v50 }
  0x44   : > { %754 = vmatprep.subr.mxu0 %v257_v51 }
  0x45   : > { %755 = vmatpush3.msra.mxu0 %v257_v51 }
  0x46   : > { %756 = vmatprep.subr.mxu0 %v256_v52 }
  0x47   : > { %757 = vmatpush3.msra.mxu0 %v256_v52 }
  0x48   : > { %758 = vmatprep.subr.mxu0 %v255_v53 }
  0x49   : > { %759 = vmatpush3.msra.mxu0 %v255_v53 }
  0x4a   : > { %760 = vmatprep.subr.mxu0 %v254_v54 }
  0x4b   : > { %761 = vmatpush3.msra.mxu0 %v254_v54 }
  0x4c   : > { %762 = vmatprep.subr.mxu0 %v253_v55 }
  0x4d   : > { %763 = vmatpush3.msra.mxu0 %v253_v55 }
  0x4e   : > { %765 = vmatmul.mubr.f32.vlgmr.msra.gmra.mxu0 %v911_v30 }
  0xed   : > { %v696_v56 = vpop.f32.mrf.mxu0 }
  0xee   : > { %v731_v57 = vpop.f32.mrf.mxu1 }
  0xef   : > { %v346_v58 = vpop.f32.mrf.mxu0  ;;  %v427_v60 = vadd.f32 %v731_v57, %v696_v56 }
  0xf0   : > { %v421_v59 = vpop.f32.mrf.mxu1 }
  0xf1   : > { %v422_v63 = vadd.f32 %v421_v59, %v346_v58 }
 0x10e   : > { %v766_v61 = vpop.f32.mrf.mxu0 }
 0x10f   : > { %v506_v0 = vadd.f32 %v766_v61, %v427_v60 }
 0x110   : > { %v496_v1 = vpop.f32.mrf.mxu0 }
 0x111   : > { %v515_v2 = vadd.f32 %v603_v62, %v506_v0  ;;  %v505_v3 = vadd.f32 %v496_v1, %v422_v63 }
 0x113   : > { %v517_v5 = vmax.f32 %v515_v2, 0.0  ;;  %v514_v6 = vadd.f32 %v603_v62, %v505_v3 }
 0x115   : > { %v521_v8 = vadd.f32 %v519_v4, %v517_v5  ;;  %v516_v9 = vmax.f32 %v514_v6, 0.0 }
 0x117   : > { %v523_v10 = vmax.f32 %v521_v8, 0.0  ;;  %v520_v11 = vadd.f32 %v518_v7, %v516_v9 }
 0x119   : > { %525 = vst [vmem:[%s217_s28 + $0x8] sm:$0xff] %v523_v10  ;;  %v522_v12 = vmax.f32 %v520_v11, 0.0 }
 0x11b   : > { %524 = vst [vmem:[%s217_s28] sm:$0xff] %v522_v12 }
 0x11c PF: > { %s14_s15 = sadd.s32 1, %s782_s15  }
 0x11d   : > { %p11_p4 = scmp.ge.s32.totalorder %s14_s15, 4  }
 0x11f   :  { %13 = sbr.rel (!%p11_p4) target bundleno = 1 (0x1), region = 69 }

</bundles_post_ra>
